<compile_context>
chip_gen: v6e
topology: v6e:2x2x1
jax: 0.10.0
libtpu: 0.0.40
codegen_flags: <defaults>
</compile_context>

<pallas_src>
import functools

import jax
import jax.numpy as jnp
from jax.experimental import pallas as pl
from jax.experimental.pallas import tpu as pltpu

LEAKY_SLOPE = 0.01   # nn.LeakyReLU default
IN_EPS = 1e-5        # nn.InstanceNorm2d default (affine=False -> no params)
DIL = 4              # SpatialGate dilation_val


def _leaky(t):
    return jnp.where(t > 0, t, LEAKY_SLOPE * t)


def _bam_kernel(x_ref, w1s_ref, b1_ref, w2_ref, b2_ref,
                wr_ref, br_ref, wt1_ref, bt1_ref, wt2_ref, bt2_ref,
                wf_ref, bf_ref, masks_ref,
                o_ref, win_ref, *, width):
    f32 = jnp.float32
    x = x_ref[0].astype(f32)                       # (C, HW), HW lane-dense
    C, HW = x.shape
    hid = wr_ref.shape[0]

    # ---------------- Channel gate (loop-free; 1/HW folded into w1s) ---------
    pooled = jnp.sum(x, axis=1, keepdims=True)                           # (C, 1)
    h = jnp.sum(w1s_ref[...] * pooled, axis=0, keepdims=True)            # (1, hid)
    h = _leaky(h + b1_ref[...])
    ca = jnp.sum(w2_ref[...] * h, axis=1, keepdims=True) + b2_ref[...]   # (C, 1)

    # ---------------- Spatial gate -------------------------------------------
    def inorm_lrelu(t):            # InstanceNorm2d(affine=False) + LeakyReLU, 1 pass
        mu = jnp.mean(t, axis=1, keepdims=True)
        ex2 = jnp.mean(t * t, axis=1, keepdims=True)
        var = jnp.maximum(ex2 - mu * mu, 0.0)
        return _leaky((t - mu) * jax.lax.rsqrt(var + IN_EPS))

    def dilated3x3(t, wt_ref, b_ref):              # t: (hid, HW)
        # 9 taps: circular lane roll (XLU) + per-tap validity mask, stacked into a
        # (9*hid, HW) scratch, then ONE fused K=9*hid matmul on the MXU.
        k = 0
        for dy in (-DIL, 0, DIL):                  # tap row offset
            for dx in (-DIL, 0, DIL):              # tap col offset
                off = dy * width + dx              # flat spatial offset of this tap
                if off == 0:
                    win_ref[k * hid:(k + 1) * hid, :] = t
                else:
                    # win[i] = t[i + off] for valid positions (mask kills the wrap).
                    shifted = pltpu.roll(t, (-off) % HW, axis=1)
                    win_ref[k * hid:(k + 1) * hid, :] = shifted * masks_ref[k:k + 1, :]
                k += 1
        return jnp.dot(wt_ref[...], win_ref[...], preferred_element_type=f32) + b_ref[...]

    s = jnp.dot(wr_ref[...], x, preferred_element_type=f32) + br_ref[...]   # 1x1 reduce
    s = inorm_lrelu(s)
    s = inorm_lrelu(dilated3x3(s, wt1_ref, bt1_ref))
    s = inorm_lrelu(dilated3x3(s, wt2_ref, bt2_ref))
    sa = jnp.dot(wf_ref[...], s, preferred_element_type=f32) + bf_ref[...]  # (1, HW)

    # ---------------- Combine: out = x * (1 + sigmoid(ca * sa)) --------------
    att = 1.0 + jax.nn.sigmoid(ca * sa)            # (C, HW); sigmoid lands on the EUP
    o_ref[0] = (x * att).astype(o_ref.dtype)


def _vmem_capacity_bytes():
    try:
        return int(pltpu.get_tpu_info().vmem_capacity_bytes)
    except Exception:
        return 64 * 1024 * 1024   # conservative fallback (v7x per-TC VMEM)


def bam_forward(x, params):
    """Fused BAM forward.  x: (B, C, H, W), f32 or bf16.  params use PyTorch layouts."""
    B, C, H, W = x.shape
    assert H == W, "ChannelGate's avg_pool2d(kernel=H, stride=H) assumes H == W"
    HW = H * W
    hid = params["c_w1"].shape[0]
    f32 = jnp.float32

    x_flat = x.reshape(B, C, HW)

    # Channel-gate params (fold the 1/HW pooling scale into fc1's weight).
    w1s = (params["c_w1"].astype(f32) / HW).T              # (C, hid)
    b1 = params["c_b1"].astype(f32).reshape(1, hid)
    w2 = params["c_w2"].astype(f32)                        # (C, hid)
    b2 = params["c_b2"].astype(f32).reshape(C, 1)
    # Spatial-gate params.
    wr = params["s_wr"].astype(f32).reshape(hid, C)        # 1x1 conv C -> hid
    br = params["s_br"].astype(f32).reshape(hid, 1)
    # Dilated conv weights as (out, 9*in) with tap k = ky*3 + kx matching the
    # kernel's (dy, dx) row-major enumeration and the window stacking order.
    wt1 = jnp.transpose(params["s_wd1"].astype(f32), (0, 2, 3, 1)).reshape(hid, 9 * hid)
    bt1 = params["s_bd1"].astype(f32).reshape(hid, 1)
    wt2 = jnp.transpose(params["s_wd2"].astype(f32), (0, 2, 3, 1)).reshape(hid, 9 * hid)
    bt2 = params["s_bd2"].astype(f32).reshape(hid, 1)
    wf = params["s_wf"].astype(f32).reshape(1, hid)        # 1x1 conv hid -> 1
    bf = params["s_bf"].astype(f32).reshape(1, 1)

    # Per-tap validity masks (row AND column in bounds) for the 9 dilated taps.
    row = jnp.arange(HW, dtype=jnp.int32) // W
    col = jnp.arange(HW, dtype=jnp.int32) % W
    mask_list = []
    for dy in (-DIL, 0, DIL):
        for dx in (-DIL, 0, DIL):
            ok = ((row + dy >= 0) & (row + dy < H) &
                  (col + dx >= 0) & (col + dx < W))
            mask_list.append(ok.astype(f32))
    masks = jnp.stack(mask_list, axis=0)                   # (9, HW)

    # ------------------ Per-chip VMEM budget & I/O buffering -----------------
    itemsize = jnp.dtype(x.dtype).itemsize
    io_blk = C * HW * itemsize                              # one x block == one out block
    cap_limit = max(32 * 1024 * 1024, int(_vmem_capacity_bytes() * 0.85))  # headroom

    # On v7x (64 MiB VMEM) large C*HW can't afford double-buffered in+out blocks;
    # this per-image step is compute-heavy enough to hide the exposed DMA.
    single_buffer_io = 4 * io_blk > (6 * cap_limit) // 10
    io_bufs = 2 if single_buffer_io else 4
    xo_map = lambda b: (b, 0, 0)
    if single_buffer_io:
        x_spec = pl.BlockSpec((1, C, HW), xo_map, pipeline_mode=pl.Buffered(1))
        o_spec = pl.BlockSpec((1, C, HW), xo_map, pipeline_mode=pl.Buffered(1))
    else:
        x_spec = pl.BlockSpec((1, C, HW), xo_map)
        o_spec = pl.BlockSpec((1, C, HW), xo_map)

    est = (io_bufs * io_blk                 # x + out pipeline buffers
           + 3 * C * HW * 4                 # f32 working copies (x, att, x*att)
           + (9 + 6) * hid * HW * 4         # window-stack scratch + spatial activations
           + 2 * 10 * HW * 4                # tap masks (double-buffered) + temporaries
           + 4 * 1024 * 1024)               # weights + Mosaic internal slack
    vmem_limit = min(cap_limit, max(16 * 1024 * 1024, int(est)))

    # Advisory cost estimate for XLA's scheduler around the custom call.
    flops = 2 * B * HW * (hid * C + 18 * hid * hid + hid) + 12 * B * C * HW
    param_bytes = 4 * (2 * C * hid + hid * C + 18 * hid * hid + 2 * hid + C + hid + 2)
    cost = pl.CostEstimate(
        flops=int(flops),
        transcendentals=int(B * C * HW),
        bytes_accessed=int(2 * B * C * HW * itemsize + param_bytes + 9 * HW * 4),
    )

    const2 = lambda b: (0, 0)
    kernel = functools.partial(_bam_kernel, width=W)

    out_flat = pl.pallas_call(
        kernel,
        out_shape=jax.ShapeDtypeStruct((B, C, HW), x.dtype),
        grid=(B,),
        in_specs=[
            x_spec,                                          # x (per batch element)
            pl.BlockSpec((C, hid), const2),                  # w1s  (fc1^T, prescaled)
            pl.BlockSpec((1, hid), const2),                  # b1
            pl.BlockSpec((C, hid), const2),                  # w2   (fc_final)
            pl.BlockSpec((C, 1), const2),                    # b2
            pl.BlockSpec((hid, C), const2),                  # wr   (1x1 reduce conv)
            pl.BlockSpec((hid, 1), const2),                  # br
            pl.BlockSpec((hid, 9 * hid), const2),            # wt1  (fused dilated conv)
            pl.BlockSpec((hid, 1), const2),                  # bt1
            pl.BlockSpec((hid, 9 * hid), const2),            # wt2
            pl.BlockSpec((hid, 1), const2),                  # bt2
            pl.BlockSpec((1, hid), const2),                  # wf   (final 1x1 conv)
            pl.BlockSpec((1, 1), const2),                    # bf
            pl.BlockSpec((9, HW), const2),                   # per-tap validity masks
        ],
        out_specs=o_spec,
        scratch_shapes=[pltpu.VMEM((9 * hid, HW), jnp.float32)],   # stacked tap windows
        compiler_params=pltpu.CompilerParams(
            dimension_semantics=("parallel",),               # v7x: needs B >= 2 for both TCs
            vmem_limit_bytes=vmem_limit),
        cost_estimate=cost,
    )(x_flat, w1s, b1, w2, b2, wr, br, wt1, bt1, wt2, bt2, wf, bf, masks)

    return out_flat.reshape(B, C, H, W)


def bam_reference(x, params):
    """Pure-JAX reference mirroring the PyTorch BAM forward."""
    pooled = jnp.mean(x, axis=(2, 3))                                   # (B, C)
    h = _leaky(pooled @ params["c_w1"].T + params["c_b1"])
    ca = (h @ params["c_w2"].T + params["c_b2"])[:, :, None, None]      # (B, C, 1, 1)

    dn = ("NCHW", "OIHW", "NCHW")

    def conv(t, w, b, dilation=1, padding=0):
        o = jax.lax.conv_general_dilated(
            t, w, window_strides=(1, 1),
            padding=((padding, padding), (padding, padding)),
            rhs_dilation=(dilation, dilation),
            dimension_numbers=dn,
            precision=jax.lax.Precision.HIGHEST)
        return o + b[None, :, None, None]

    def inorm_lrelu(t):
        mu = jnp.mean(t, axis=(2, 3), keepdims=True)
        var = jnp.mean(jnp.square(t - mu), axis=(2, 3), keepdims=True)
        return _leaky((t - mu) * jax.lax.rsqrt(var + IN_EPS))

    s = inorm_lrelu(conv(x, params["s_wr"], params["s_br"]))
    s = inorm_lrelu(conv(s, params["s_wd1"], params["s_bd1"], dilation=DIL, padding=DIL))
    s = inorm_lrelu(conv(s, params["s_wd2"], params["s_bd2"], dilation=DIL, padding=DIL))
    sa = conv(s, params["s_wf"], params["s_bf"])                         # (B, 1, H, W)

    att = 1.0 + jax.nn.sigmoid(ca * sa)
    return att * x


if __name__ == "__main__":
    # gate_channel=32, reduction_ratio=16 -> hidden = 2; small 16x16 spatial, batch 2.
    B, C, H, W = 2, 32, 16, 16
    hid = C // 16

    key = jax.random.PRNGKey(0)
    ks = jax.random.split(key, 13)
    x = jax.random.normal(ks[0], (B, C, H, W), dtype=jnp.float32)
    params = {
        # ChannelGate (nn.Linear layouts: (out, in), (out,))
        "c_w1": 0.1 * jax.random.normal(ks[1], (hid, C), jnp.float32),
        "c_b1": 0.1 * jax.random.normal(ks[2], (hid,), jnp.float32),
        "c_w2": 0.1 * jax.random.normal(ks[3], (C, hid), jnp.float32),
        "c_b2": 0.1 * jax.random.normal(ks[4], (C,), jnp.float32),
        # SpatialGate (nn.Conv2d layouts: (out, in, kh, kw), (out,))
        "s_wr": 0.1 * jax.random.normal(ks[5], (hid, C, 1, 1), jnp.float32),
        "s_br": 0.1 * jax.random.normal(ks[6], (hid,), jnp.float32),
        "s_wd1": 0.1 * jax.random.normal(ks[7], (hid, hid, 3, 3), jnp.float32),
        "s_bd1": 0.1 * jax.random.normal(ks[8], (hid,), jnp.float32),
        "s_wd2": 0.1 * jax.random.normal(ks[9], (hid, hid, 3, 3), jnp.float32),
        "s_bd2": 0.1 * jax.random.normal(ks[10], (hid,), jnp.float32),
        "s_wf": 0.1 * jax.random.normal(ks[11], (1, hid, 1, 1), jnp.float32),
        "s_bf": 0.1 * jax.random.normal(ks[12], (1,), jnp.float32),
    }

    out = jax.block_until_ready(bam_forward(x, params))
    ref = jax.block_until_ready(bam_reference(x, params))

    assert out.shape == (B, C, H, W)
    max_err = float(jnp.max(jnp.abs(out - ref)))
    assert jnp.allclose(out, ref, atol=1e-3, rtol=1e-3), f"mismatch vs reference: {max_err}"

    print("KERNEL_OK")
</pallas_src>

<mosaic_0001>
module attributes {stable_mosaic.version = 11 : i64} {
  func.func @_bam_kernel(%arg0: i32, %arg1: memref<1x32x256xf32, #tpu.memory_space<vmem>>, %arg2: memref<32x2xf32, #tpu.memory_space<vmem>>, %arg3: memref<1x2xf32, #tpu.memory_space<vmem>>, %arg4: memref<32x2xf32, #tpu.memory_space<vmem>>, %arg5: memref<32x1xf32, #tpu.memory_space<vmem>>, %arg6: memref<2x32xf32, #tpu.memory_space<vmem>>, %arg7: memref<2x1xf32, #tpu.memory_space<vmem>>, %arg8: memref<2x18xf32, #tpu.memory_space<vmem>>, %arg9: memref<2x1xf32, #tpu.memory_space<vmem>>, %arg10: memref<2x18xf32, #tpu.memory_space<vmem>>, %arg11: memref<2x1xf32, #tpu.memory_space<vmem>>, %arg12: memref<1x2xf32, #tpu.memory_space<vmem>>, %arg13: memref<1x1xf32, #tpu.memory_space<vmem>>, %arg14: memref<9x256xf32, #tpu.memory_space<vmem>>, %arg15: memref<1x32x256xf32, #tpu.memory_space<vmem>>, %arg16: memref<18x256xf32, #tpu.memory_space<vmem>>) attributes {dimension_semantics = [#tpu.dimension_semantics<parallel>], iteration_bounds = array<i64: 2>, scalar_prefetch = 0 : i64, scratch_operands = 1 : i64, tpu.core_type = #tpu.core_type<tc>, window_params = [{transform_indices = @transform_0, window_bounds = array<i64: 1, 32, 256>}, {pipeline_mode = #tpu.pipeline_mode<synchronous>, transform_indices = @transform_1, window_bounds = array<i64: 32, 2>}, {pipeline_mode = #tpu.pipeline_mode<synchronous>, transform_indices = @transform_2, window_bounds = array<i64: 1, 2>}, {pipeline_mode = #tpu.pipeline_mode<synchronous>, transform_indices = @transform_3, window_bounds = array<i64: 32, 2>}, {pipeline_mode = #tpu.pipeline_mode<synchronous>, transform_indices = @transform_4, window_bounds = array<i64: 32, 1>}, {pipeline_mode = #tpu.pipeline_mode<synchronous>, transform_indices = @transform_5, window_bounds = array<i64: 2, 32>}, {pipeline_mode = #tpu.pipeline_mode<synchronous>, transform_indices = @transform_6, window_bounds = array<i64: 2, 1>}, {pipeline_mode = #tpu.pipeline_mode<synchronous>, transform_indices = @transform_7, window_bounds = array<i64: 2, 18>}, {pipeline_mode = #tpu.pipeline_mode<synchronous>, transform_indices = @transform_8, window_bounds = array<i64: 2, 1>}, {pipeline_mode = #tpu.pipeline_mode<synchronous>, transform_indices = @transform_9, window_bounds = array<i64: 2, 18>}, {pipeline_mode = #tpu.pipeline_mode<synchronous>, transform_indices = @transform_10, window_bounds = array<i64: 2, 1>}, {pipeline_mode = #tpu.pipeline_mode<synchronous>, transform_indices = @transform_11, window_bounds = array<i64: 1, 2>}, {pipeline_mode = #tpu.pipeline_mode<synchronous>, transform_indices = @transform_12, window_bounds = array<i64: 1, 1>}, {pipeline_mode = #tpu.pipeline_mode<synchronous>, transform_indices = @transform_13, window_bounds = array<i64: 9, 256>}, {transform_indices = @transform_14, window_bounds = array<i64: 1, 32, 256>}]} {
    %c0 = arith.constant 0 : index
    %c0_0 = arith.constant 0 : index
    %c0_1 = arith.constant 0 : index
    %0 = vector.load %arg1[%c0, %c0_0, %c0_1] : memref<1x32x256xf32, #tpu.memory_space<vmem>>, vector<1x32x256xf32>
    %1 = vector.shape_cast %0 : vector<1x32x256xf32> to vector<32x256xf32>
    %cst = arith.constant dense<0.000000e+00> : vector<32xf32>
    %2 = vector.multi_reduction <add>, %1, %cst [1] : vector<32x256xf32> to vector<32xf32>
    %3 = vector.shape_cast %2 : vector<32xf32> to vector<32x1xf32>
    %c0_2 = arith.constant 0 : index
    %c0_3 = arith.constant 0 : index
    %4 = vector.load %arg2[%c0_2, %c0_3] : memref<32x2xf32, #tpu.memory_space<vmem>>, vector<32x2xf32>
    %5 = vector.broadcast %3 : vector<32x1xf32> to vector<32x2xf32>
    %6 = arith.mulf %4, %5 : vector<32x2xf32>
    %cst_4 = arith.constant dense<0.000000e+00> : vector<2xf32>
    %7 = vector.multi_reduction <add>, %6, %cst_4 [0] : vector<32x2xf32> to vector<2xf32>
    %8 = vector.shape_cast %7 : vector<2xf32> to vector<1x2xf32>
    %c0_5 = arith.constant 0 : index
    %c0_6 = arith.constant 0 : index
    %9 = vector.load %arg3[%c0_5, %c0_6] : memref<1x2xf32, #tpu.memory_space<vmem>>, vector<1x2xf32>
    %10 = arith.addf %8, %9 : vector<1x2xf32>
    %cst_7 = arith.constant 0.000000e+00 : f32
    %11 = vector.broadcast %cst_7 : f32 to vector<1x2xf32>
    %12 = arith.cmpf ogt, %10, %11 : vector<1x2xf32>
    %cst_8 = arith.constant 0.00999999977 : f32
    %13 = vector.broadcast %cst_8 : f32 to vector<1x2xf32>
    %14 = arith.mulf %13, %10 : vector<1x2xf32>
    %15 = arith.select %12, %10, %14 : vector<1x2xi1>, vector<1x2xf32>
    %c0_9 = arith.constant 0 : index
    %c0_10 = arith.constant 0 : index
    %16 = vector.load %arg4[%c0_9, %c0_10] : memref<32x2xf32, #tpu.memory_space<vmem>>, vector<32x2xf32>
    %17 = vector.broadcast %15 : vector<1x2xf32> to vector<32x2xf32>
    %18 = arith.mulf %16, %17 : vector<32x2xf32>
    %cst_11 = arith.constant dense<0.000000e+00> : vector<32xf32>
    %19 = vector.multi_reduction <add>, %18, %cst_11 [1] : vector<32x2xf32> to vector<32xf32>
    %20 = vector.shape_cast %19 : vector<32xf32> to vector<32x1xf32>
    %c0_12 = arith.constant 0 : index
    %c0_13 = arith.constant 0 : index
    %21 = vector.load %arg5[%c0_12, %c0_13] : memref<32x1xf32, #tpu.memory_space<vmem>>, vector<32x1xf32>
    %22 = arith.addf %20, %21 : vector<32x1xf32>
    %c0_14 = arith.constant 0 : index
    %c0_15 = arith.constant 0 : index
    %23 = vector.load %arg6[%c0_14, %c0_15] : memref<2x32xf32, #tpu.memory_space<vmem>>, vector<2x32xf32>
    %cst_16 = arith.constant dense<0.000000e+00> : vector<2x256xf32>
    %24 = tpu.matmul %23, %1, %cst_16 {dimension_numbers = #tpu.dot_dimension_numbers<[1], [0], [0], [1], [0, 0, 1, 1], [], []>} : vector<2x32xf32>, vector<32x256xf32>, vector<2x256xf32> -> vector<2x256xf32>
    %c0_17 = arith.constant 0 : index
    %c0_18 = arith.constant 0 : index
    %25 = vector.load %arg7[%c0_17, %c0_18] : memref<2x1xf32, #tpu.memory_space<vmem>>, vector<2x1xf32>
    %26 = vector.broadcast %25 : vector<2x1xf32> to vector<2x256xf32>
    %27 = arith.addf %24, %26 : vector<2x256xf32>
    %cst_19 = arith.constant dense<0.000000e+00> : vector<2xf32>
    %28 = vector.multi_reduction <add>, %27, %cst_19 [1] : vector<2x256xf32> to vector<2xf32>
    %29 = vector.shape_cast %28 : vector<2xf32> to vector<2x1xf32>
    %cst_20 = arith.constant 2.560000e+02 : f32
    %30 = vector.broadcast %cst_20 : f32 to vector<2x1xf32>
    %31 = arith.divf %29, %30 : vector<2x1xf32>
    %32 = arith.mulf %27, %27 : vector<2x256xf32>
    %cst_21 = arith.constant dense<0.000000e+00> : vector<2xf32>
    %33 = vector.multi_reduction <add>, %32, %cst_21 [1] : vector<2x256xf32> to vector<2xf32>
    %34 = vector.shape_cast %33 : vector<2xf32> to vector<2x1xf32>
    %cst_22 = arith.constant 2.560000e+02 : f32
    %35 = vector.broadcast %cst_22 : f32 to vector<2x1xf32>
    %36 = arith.divf %34, %35 : vector<2x1xf32>
    %37 = arith.mulf %31, %31 : vector<2x1xf32>
    %38 = arith.subf %36, %37 : vector<2x1xf32>
    %cst_23 = arith.constant 0.000000e+00 : f32
    %39 = vector.broadcast %cst_23 : f32 to vector<2x1xf32>
    %40 = arith.maximumf %38, %39 : vector<2x1xf32>
    %41 = vector.broadcast %31 : vector<2x1xf32> to vector<2x256xf32>
    %42 = arith.subf %27, %41 : vector<2x256xf32>
    %cst_24 = arith.constant 9.99999974E-6 : f32
    %43 = vector.broadcast %cst_24 : f32 to vector<2x1xf32>
    %44 = arith.addf %40, %43 : vector<2x1xf32>
    %45 = math.rsqrt %44 : vector<2x1xf32>
    %46 = vector.broadcast %45 : vector<2x1xf32> to vector<2x256xf32>
    %47 = arith.mulf %42, %46 : vector<2x256xf32>
    %cst_25 = arith.constant 0.000000e+00 : f32
    %48 = vector.broadcast %cst_25 : f32 to vector<2x256xf32>
    %49 = arith.cmpf ogt, %47, %48 : vector<2x256xf32>
    %cst_26 = arith.constant 0.00999999977 : f32
    %50 = vector.broadcast %cst_26 : f32 to vector<2x256xf32>
    %51 = arith.mulf %50, %47 : vector<2x256xf32>
    %52 = arith.select %49, %47, %51 : vector<2x256xi1>, vector<2x256xf32>
    %c68_i32 = arith.constant 68 : i32
    %53 = tpu.dynamic_rotate %52 by %c68_i32 dim 1 : vector<2x256xf32>, i32 -> vector<2x256xf32>
    %c0_27 = arith.constant 0 : index
    %c0_28 = arith.constant 0 : index
    %54 = vector.load %arg14[%c0_27, %c0_28] : memref<9x256xf32, #tpu.memory_space<vmem>>, vector<1x256xf32>
    %55 = vector.broadcast %54 : vector<1x256xf32> to vector<2x256xf32>
    %56 = arith.mulf %53, %55 : vector<2x256xf32>
    %c0_29 = arith.constant 0 : index
    %c0_30 = arith.constant 0 : index
    %57 = vector.load %arg16[%c0_29, %c0_30] : memref<18x256xf32, #tpu.memory_space<vmem>>, vector<2x256xf32>
    tpu.vector_store %arg16[%c0_29, %c0_30], %56 {strides = array<i32>} : memref<18x256xf32, #tpu.memory_space<vmem>>, vector<2x256xf32>,
    %c64_i32 = arith.constant 64 : i32
    %58 = tpu.dynamic_rotate %52 by %c64_i32 dim 1 : vector<2x256xf32>, i32 -> vector<2x256xf32>
    %c1 = arith.constant 1 : index
    %c0_31 = arith.constant 0 : index
    %59 = vector.load %arg14[%c1, %c0_31] : memref<9x256xf32, #tpu.memory_space<vmem>>, vector<1x256xf32>
    %60 = vector.broadcast %59 : vector<1x256xf32> to vector<2x256xf32>
    %61 = arith.mulf %58, %60 : vector<2x256xf32>
    %c2 = arith.constant 2 : index
    %c0_32 = arith.constant 0 : index
    %62 = vector.load %arg16[%c2, %c0_32] : memref<18x256xf32, #tpu.memory_space<vmem>>, vector<2x256xf32>
    tpu.vector_store %arg16[%c2, %c0_32], %61 {strides = array<i32>} : memref<18x256xf32, #tpu.memory_space<vmem>>, vector<2x256xf32>,
    %c60_i32 = arith.constant 60 : i32
    %63 = tpu.dynamic_rotate %52 by %c60_i32 dim 1 : vector<2x256xf32>, i32 -> vector<2x256xf32>
    %c2_33 = arith.constant 2 : index
    %c0_34 = arith.constant 0 : index
    %64 = vector.load %arg14[%c2_33, %c0_34] : memref<9x256xf32, #tpu.memory_space<vmem>>, vector<1x256xf32>
    %65 = vector.broadcast %64 : vector<1x256xf32> to vector<2x256xf32>
    %66 = arith.mulf %63, %65 : vector<2x256xf32>
    %c4 = arith.constant 4 : index
    %c0_35 = arith.constant 0 : index
    %67 = vector.load %arg16[%c4, %c0_35] : memref<18x256xf32, #tpu.memory_space<vmem>>, vector<2x256xf32>
    tpu.vector_store %arg16[%c4, %c0_35], %66 {strides = array<i32>} : memref<18x256xf32, #tpu.memory_space<vmem>>, vector<2x256xf32>,
    %c4_i32 = arith.constant 4 : i32
    %68 = tpu.dynamic_rotate %52 by %c4_i32 dim 1 : vector<2x256xf32>, i32 -> vector<2x256xf32>
    %c3 = arith.constant 3 : index
    %c0_36 = arith.constant 0 : index
    %69 = vector.load %arg14[%c3, %c0_36] : memref<9x256xf32, #tpu.memory_space<vmem>>, vector<1x256xf32>
    %70 = vector.broadcast %69 : vector<1x256xf32> to vector<2x256xf32>
    %71 = arith.mulf %68, %70 : vector<2x256xf32>
    %c6 = arith.constant 6 : index
    %c0_37 = arith.constant 0 : index
    %72 = vector.load %arg16[%c6, %c0_37] : memref<18x256xf32, #tpu.memory_space<vmem>>, vector<2x256xf32>
    tpu.vector_store %arg16[%c6, %c0_37], %71 {strides = array<i32>} : memref<18x256xf32, #tpu.memory_space<vmem>>, vector<2x256xf32>,
    %c8 = arith.constant 8 : index
    %c0_38 = arith.constant 0 : index
    %73 = vector.load %arg16[%c8, %c0_38] : memref<18x256xf32, #tpu.memory_space<vmem>>, vector<2x256xf32>
    tpu.vector_store %arg16[%c8, %c0_38], %52 {strides = array<i32>} : memref<18x256xf32, #tpu.memory_space<vmem>>, vector<2x256xf32>,
    %c252_i32 = arith.constant 252 : i32
    %74 = tpu.dynamic_rotate %52 by %c252_i32 dim 1 : vector<2x256xf32>, i32 -> vector<2x256xf32>
    %c5 = arith.constant 5 : index
    %c0_39 = arith.constant 0 : index
    %75 = vector.load %arg14[%c5, %c0_39] : memref<9x256xf32, #tpu.memory_space<vmem>>, vector<1x256xf32>
    %76 = vector.broadcast %75 : vector<1x256xf32> to vector<2x256xf32>
    %77 = arith.mulf %74, %76 : vector<2x256xf32>
    %c10 = arith.constant 10 : index
    %c0_40 = arith.constant 0 : index
    %78 = vector.load %arg16[%c10, %c0_40] : memref<18x256xf32, #tpu.memory_space<vmem>>, vector<2x256xf32>
    tpu.vector_store %arg16[%c10, %c0_40], %77 {strides = array<i32>} : memref<18x256xf32, #tpu.memory_space<vmem>>, vector<2x256xf32>,
    %c196_i32 = arith.constant 196 : i32
    %79 = tpu.dynamic_rotate %52 by %c196_i32 dim 1 : vector<2x256xf32>, i32 -> vector<2x256xf32>
    %c6_41 = arith.constant 6 : index
    %c0_42 = arith.constant 0 : index
    %80 = vector.load %arg14[%c6_41, %c0_42] : memref<9x256xf32, #tpu.memory_space<vmem>>, vector<1x256xf32>
    %81 = vector.broadcast %80 : vector<1x256xf32> to vector<2x256xf32>
    %82 = arith.mulf %79, %81 : vector<2x256xf32>
    %c12 = arith.constant 12 : index
    %c0_43 = arith.constant 0 : index
    %83 = vector.load %arg16[%c12, %c0_43] : memref<18x256xf32, #tpu.memory_space<vmem>>, vector<2x256xf32>
    tpu.vector_store %arg16[%c12, %c0_43], %82 {strides = array<i32>} : memref<18x256xf32, #tpu.memory_space<vmem>>, vector<2x256xf32>,
    %c192_i32 = arith.constant 192 : i32
    %84 = tpu.dynamic_rotate %52 by %c192_i32 dim 1 : vector<2x256xf32>, i32 -> vector<2x256xf32>
    %c7 = arith.constant 7 : index
    %c0_44 = arith.constant 0 : index
    %85 = vector.load %arg14[%c7, %c0_44] : memref<9x256xf32, #tpu.memory_space<vmem>>, vector<1x256xf32>
    %86 = vector.broadcast %85 : vector<1x256xf32> to vector<2x256xf32>
    %87 = arith.mulf %84, %86 : vector<2x256xf32>
    %c14 = arith.constant 14 : index
    %c0_45 = arith.constant 0 : index
    %88 = vector.load %arg16[%c14, %c0_45] : memref<18x256xf32, #tpu.memory_space<vmem>>, vector<2x256xf32>
    tpu.vector_store %arg16[%c14, %c0_45], %87 {strides = array<i32>} : memref<18x256xf32, #tpu.memory_space<vmem>>, vector<2x256xf32>,
    %c188_i32 = arith.constant 188 : i32
    %89 = tpu.dynamic_rotate %52 by %c188_i32 dim 1 : vector<2x256xf32>, i32 -> vector<2x256xf32>
    %c8_46 = arith.constant 8 : index
    %c0_47 = arith.constant 0 : index
    %90 = vector.load %arg14[%c8_46, %c0_47] : memref<9x256xf32, #tpu.memory_space<vmem>>, vector<1x256xf32>
    %91 = vector.broadcast %90 : vector<1x256xf32> to vector<2x256xf32>
    %92 = arith.mulf %89, %91 : vector<2x256xf32>
    %c16 = arith.constant 16 : index
    %c0_48 = arith.constant 0 : index
    %93 = vector.load %arg16[%c16, %c0_48] : memref<18x256xf32, #tpu.memory_space<vmem>>, vector<2x256xf32>
    tpu.vector_store %arg16[%c16, %c0_48], %92 {strides = array<i32>} : memref<18x256xf32, #tpu.memory_space<vmem>>, vector<2x256xf32>,
    %c0_49 = arith.constant 0 : index
    %c0_50 = arith.constant 0 : index
    %94 = vector.load %arg8[%c0_49, %c0_50] : memref<2x18xf32, #tpu.memory_space<vmem>>, vector<2x18xf32>
    %c0_51 = arith.constant 0 : index
    %c0_52 = arith.constant 0 : index
    %95 = vector.load %arg16[%c0_51, %c0_52] : memref<18x256xf32, #tpu.memory_space<vmem>>, vector<18x256xf32>
    %cst_53 = arith.constant dense<0.000000e+00> : vector<2x256xf32>
    %96 = tpu.matmul %94, %95, %cst_53 {dimension_numbers = #tpu.dot_dimension_numbers<[1], [0], [0], [1], [0, 0, 1, 1], [], []>} : vector<2x18xf32>, vector<18x256xf32>, vector<2x256xf32> -> vector<2x256xf32>
    %c0_54 = arith.constant 0 : index
    %c0_55 = arith.constant 0 : index
    %97 = vector.load %arg9[%c0_54, %c0_55] : memref<2x1xf32, #tpu.memory_space<vmem>>, vector<2x1xf32>
    %98 = vector.broadcast %97 : vector<2x1xf32> to vector<2x256xf32>
    %99 = arith.addf %96, %98 : vector<2x256xf32>
    %cst_56 = arith.constant dense<0.000000e+00> : vector<2xf32>
    %100 = vector.multi_reduction <add>, %99, %cst_56 [1] : vector<2x256xf32> to vector<2xf32>
    %101 = vector.shape_cast %100 : vector<2xf32> to vector<2x1xf32>
    %cst_57 = arith.constant 2.560000e+02 : f32
    %102 = vector.broadcast %cst_57 : f32 to vector<2x1xf32>
    %103 = arith.divf %101, %102 : vector<2x1xf32>
    %104 = arith.mulf %99, %99 : vector<2x256xf32>
    %cst_58 = arith.constant dense<0.000000e+00> : vector<2xf32>
    %105 = vector.multi_reduction <add>, %104, %cst_58 [1] : vector<2x256xf32> to vector<2xf32>
    %106 = vector.shape_cast %105 : vector<2xf32> to vector<2x1xf32>
    %cst_59 = arith.constant 2.560000e+02 : f32
    %107 = vector.broadcast %cst_59 : f32 to vector<2x1xf32>
    %108 = arith.divf %106, %107 : vector<2x1xf32>
    %109 = arith.mulf %103, %103 : vector<2x1xf32>
    %110 = arith.subf %108, %109 : vector<2x1xf32>
    %cst_60 = arith.constant 0.000000e+00 : f32
    %111 = vector.broadcast %cst_60 : f32 to vector<2x1xf32>
    %112 = arith.maximumf %110, %111 : vector<2x1xf32>
    %113 = vector.broadcast %103 : vector<2x1xf32> to vector<2x256xf32>
    %114 = arith.subf %99, %113 : vector<2x256xf32>
    %cst_61 = arith.constant 9.99999974E-6 : f32
    %115 = vector.broadcast %cst_61 : f32 to vector<2x1xf32>
    %116 = arith.addf %112, %115 : vector<2x1xf32>
    %117 = math.rsqrt %116 : vector<2x1xf32>
    %118 = vector.broadcast %117 : vector<2x1xf32> to vector<2x256xf32>
    %119 = arith.mulf %114, %118 : vector<2x256xf32>
    %cst_62 = arith.constant 0.000000e+00 : f32
    %120 = vector.broadcast %cst_62 : f32 to vector<2x256xf32>
    %121 = arith.cmpf ogt, %119, %120 : vector<2x256xf32>
    %cst_63 = arith.constant 0.00999999977 : f32
    %122 = vector.broadcast %cst_63 : f32 to vector<2x256xf32>
    %123 = arith.mulf %122, %119 : vector<2x256xf32>
    %124 = arith.select %121, %119, %123 : vector<2x256xi1>, vector<2x256xf32>
    %c68_i32_64 = arith.constant 68 : i32
    %125 = tpu.dynamic_rotate %124 by %c68_i32_64 dim 1 : vector<2x256xf32>, i32 -> vector<2x256xf32>
    %c0_65 = arith.constant 0 : index
    %c0_66 = arith.constant 0 : index
    %126 = vector.load %arg14[%c0_65, %c0_66] : memref<9x256xf32, #tpu.memory_space<vmem>>, vector<1x256xf32>
    %127 = vector.broadcast %126 : vector<1x256xf32> to vector<2x256xf32>
    %128 = arith.mulf %125, %127 : vector<2x256xf32>
    %c0_67 = arith.constant 0 : index
    %c0_68 = arith.constant 0 : index
    %129 = vector.load %arg16[%c0_67, %c0_68] : memref<18x256xf32, #tpu.memory_space<vmem>>, vector<2x256xf32>
    tpu.vector_store %arg16[%c0_67, %c0_68], %128 {strides = array<i32>} : memref<18x256xf32, #tpu.memory_space<vmem>>, vector<2x256xf32>,
    %c64_i32_69 = arith.constant 64 : i32
    %130 = tpu.dynamic_rotate %124 by %c64_i32_69 dim 1 : vector<2x256xf32>, i32 -> vector<2x256xf32>
    %c1_70 = arith.constant 1 : index
    %c0_71 = arith.constant 0 : index
    %131 = vector.load %arg14[%c1_70, %c0_71] : memref<9x256xf32, #tpu.memory_space<vmem>>, vector<1x256xf32>
    %132 = vector.broadcast %131 : vector<1x256xf32> to vector<2x256xf32>
    %133 = arith.mulf %130, %132 : vector<2x256xf32>
    %c2_72 = arith.constant 2 : index
    %c0_73 = arith.constant 0 : index
    %134 = vector.load %arg16[%c2_72, %c0_73] : memref<18x256xf32, #tpu.memory_space<vmem>>, vector<2x256xf32>
    tpu.vector_store %arg16[%c2_72, %c0_73], %133 {strides = array<i32>} : memref<18x256xf32, #tpu.memory_space<vmem>>, vector<2x256xf32>,
    %c60_i32_74 = arith.constant 60 : i32
    %135 = tpu.dynamic_rotate %124 by %c60_i32_74 dim 1 : vector<2x256xf32>, i32 -> vector<2x256xf32>
    %c2_75 = arith.constant 2 : index
    %c0_76 = arith.constant 0 : index
    %136 = vector.load %arg14[%c2_75, %c0_76] : memref<9x256xf32, #tpu.memory_space<vmem>>, vector<1x256xf32>
    %137 = vector.broadcast %136 : vector<1x256xf32> to vector<2x256xf32>
    %138 = arith.mulf %135, %137 : vector<2x256xf32>
    %c4_77 = arith.constant 4 : index
    %c0_78 = arith.constant 0 : index
    %139 = vector.load %arg16[%c4_77, %c0_78] : memref<18x256xf32, #tpu.memory_space<vmem>>, vector<2x256xf32>
    tpu.vector_store %arg16[%c4_77, %c0_78], %138 {strides = array<i32>} : memref<18x256xf32, #tpu.memory_space<vmem>>, vector<2x256xf32>,
    %c4_i32_79 = arith.constant 4 : i32
    %140 = tpu.dynamic_rotate %124 by %c4_i32_79 dim 1 : vector<2x256xf32>, i32 -> vector<2x256xf32>
    %c3_80 = arith.constant 3 : index
    %c0_81 = arith.constant 0 : index
    %141 = vector.load %arg14[%c3_80, %c0_81] : memref<9x256xf32, #tpu.memory_space<vmem>>, vector<1x256xf32>
    %142 = vector.broadcast %141 : vector<1x256xf32> to vector<2x256xf32>
    %143 = arith.mulf %140, %142 : vector<2x256xf32>
    %c6_82 = arith.constant 6 : index
    %c0_83 = arith.constant 0 : index
    %144 = vector.load %arg16[%c6_82, %c0_83] : memref<18x256xf32, #tpu.memory_space<vmem>>, vector<2x256xf32>
    tpu.vector_store %arg16[%c6_82, %c0_83], %143 {strides = array<i32>} : memref<18x256xf32, #tpu.memory_space<vmem>>, vector<2x256xf32>,
    %c8_84 = arith.constant 8 : index
    %c0_85 = arith.constant 0 : index
    %145 = vector.load %arg16[%c8_84, %c0_85] : memref<18x256xf32, #tpu.memory_space<vmem>>, vector<2x256xf32>
    tpu.vector_store %arg16[%c8_84, %c0_85], %124 {strides = array<i32>} : memref<18x256xf32, #tpu.memory_space<vmem>>, vector<2x256xf32>,
    %c252_i32_86 = arith.constant 252 : i32
    %146 = tpu.dynamic_rotate %124 by %c252_i32_86 dim 1 : vector<2x256xf32>, i32 -> vector<2x256xf32>
    %c5_87 = arith.constant 5 : index
    %c0_88 = arith.constant 0 : index
    %147 = vector.load %arg14[%c5_87, %c0_88] : memref<9x256xf32, #tpu.memory_space<vmem>>, vector<1x256xf32>
    %148 = vector.broadcast %147 : vector<1x256xf32> to vector<2x256xf32>
    %149 = arith.mulf %146, %148 : vector<2x256xf32>
    %c10_89 = arith.constant 10 : index
    %c0_90 = arith.constant 0 : index
    %150 = vector.load %arg16[%c10_89, %c0_90] : memref<18x256xf32, #tpu.memory_space<vmem>>, vector<2x256xf32>
    tpu.vector_store %arg16[%c10_89, %c0_90], %149 {strides = array<i32>} : memref<18x256xf32, #tpu.memory_space<vmem>>, vector<2x256xf32>,
    %c196_i32_91 = arith.constant 196 : i32
    %151 = tpu.dynamic_rotate %124 by %c196_i32_91 dim 1 : vector<2x256xf32>, i32 -> vector<2x256xf32>
    %c6_92 = arith.constant 6 : index
    %c0_93 = arith.constant 0 : index
    %152 = vector.load %arg14[%c6_92, %c0_93] : memref<9x256xf32, #tpu.memory_space<vmem>>, vector<1x256xf32>
    %153 = vector.broadcast %152 : vector<1x256xf32> to vector<2x256xf32>
    %154 = arith.mulf %151, %153 : vector<2x256xf32>
    %c12_94 = arith.constant 12 : index
    %c0_95 = arith.constant 0 : index
    %155 = vector.load %arg16[%c12_94, %c0_95] : memref<18x256xf32, #tpu.memory_space<vmem>>, vector<2x256xf32>
    tpu.vector_store %arg16[%c12_94, %c0_95], %154 {strides = array<i32>} : memref<18x256xf32, #tpu.memory_space<vmem>>, vector<2x256xf32>,
    %c192_i32_96 = arith.constant 192 : i32
    %156 = tpu.dynamic_rotate %124 by %c192_i32_96 dim 1 : vector<2x256xf32>, i32 -> vector<2x256xf32>
    %c7_97 = arith.constant 7 : index
    %c0_98 = arith.constant 0 : index
    %157 = vector.load %arg14[%c7_97, %c0_98] : memref<9x256xf32, #tpu.memory_space<vmem>>, vector<1x256xf32>
    %158 = vector.broadcast %157 : vector<1x256xf32> to vector<2x256xf32>
    %159 = arith.mulf %156, %158 : vector<2x256xf32>
    %c14_99 = arith.constant 14 : index
    %c0_100 = arith.constant 0 : index
    %160 = vector.load %arg16[%c14_99, %c0_100] : memref<18x256xf32, #tpu.memory_space<vmem>>, vector<2x256xf32>
    tpu.vector_store %arg16[%c14_99, %c0_100], %159 {strides = array<i32>} : memref<18x256xf32, #tpu.memory_space<vmem>>, vector<2x256xf32>,
    %c188_i32_101 = arith.constant 188 : i32
    %161 = tpu.dynamic_rotate %124 by %c188_i32_101 dim 1 : vector<2x256xf32>, i32 -> vector<2x256xf32>
    %c8_102 = arith.constant 8 : index
    %c0_103 = arith.constant 0 : index
    %162 = vector.load %arg14[%c8_102, %c0_103] : memref<9x256xf32, #tpu.memory_space<vmem>>, vector<1x256xf32>
    %163 = vector.broadcast %162 : vector<1x256xf32> to vector<2x256xf32>
    %164 = arith.mulf %161, %163 : vector<2x256xf32>
    %c16_104 = arith.constant 16 : index
    %c0_105 = arith.constant 0 : index
    %165 = vector.load %arg16[%c16_104, %c0_105] : memref<18x256xf32, #tpu.memory_space<vmem>>, vector<2x256xf32>
    tpu.vector_store %arg16[%c16_104, %c0_105], %164 {strides = array<i32>} : memref<18x256xf32, #tpu.memory_space<vmem>>, vector<2x256xf32>,
    %c0_106 = arith.constant 0 : index
    %c0_107 = arith.constant 0 : index
    %166 = vector.load %arg10[%c0_106, %c0_107] : memref<2x18xf32, #tpu.memory_space<vmem>>, vector<2x18xf32>
    %c0_108 = arith.constant 0 : index
    %c0_109 = arith.constant 0 : index
    %167 = vector.load %arg16[%c0_108, %c0_109] : memref<18x256xf32, #tpu.memory_space<vmem>>, vector<18x256xf32>
    %cst_110 = arith.constant dense<0.000000e+00> : vector<2x256xf32>
    %168 = tpu.matmul %166, %167, %cst_110 {dimension_numbers = #tpu.dot_dimension_numbers<[1], [0], [0], [1], [0, 0, 1, 1], [], []>} : vector<2x18xf32>, vector<18x256xf32>, vector<2x256xf32> -> vector<2x256xf32>
    %c0_111 = arith.constant 0 : index
    %c0_112 = arith.constant 0 : index
    %169 = vector.load %arg11[%c0_111, %c0_112] : memref<2x1xf32, #tpu.memory_space<vmem>>, vector<2x1xf32>
    %170 = vector.broadcast %169 : vector<2x1xf32> to vector<2x256xf32>
    %171 = arith.addf %168, %170 : vector<2x256xf32>
    %cst_113 = arith.constant dense<0.000000e+00> : vector<2xf32>
    %172 = vector.multi_reduction <add>, %171, %cst_113 [1] : vector<2x256xf32> to vector<2xf32>
    %173 = vector.shape_cast %172 : vector<2xf32> to vector<2x1xf32>
    %cst_114 = arith.constant 2.560000e+02 : f32
    %174 = vector.broadcast %cst_114 : f32 to vector<2x1xf32>
    %175 = arith.divf %173, %174 : vector<2x1xf32>
    %176 = arith.mulf %171, %171 : vector<2x256xf32>
    %cst_115 = arith.constant dense<0.000000e+00> : vector<2xf32>
    %177 = vector.multi_reduction <add>, %176, %cst_115 [1] : vector<2x256xf32> to vector<2xf32>
    %178 = vector.shape_cast %177 : vector<2xf32> to vector<2x1xf32>
    %cst_116 = arith.constant 2.560000e+02 : f32
    %179 = vector.broadcast %cst_116 : f32 to vector<2x1xf32>
    %180 = arith.divf %178, %179 : vector<2x1xf32>
    %181 = arith.mulf %175, %175 : vector<2x1xf32>
    %182 = arith.subf %180, %181 : vector<2x1xf32>
    %cst_117 = arith.constant 0.000000e+00 : f32
    %183 = vector.broadcast %cst_117 : f32 to vector<2x1xf32>
    %184 = arith.maximumf %182, %183 : vector<2x1xf32>
    %185 = vector.broadcast %175 : vector<2x1xf32> to vector<2x256xf32>
    %186 = arith.subf %171, %185 : vector<2x256xf32>
    %cst_118 = arith.constant 9.99999974E-6 : f32
    %187 = vector.broadcast %cst_118 : f32 to vector<2x1xf32>
    %188 = arith.addf %184, %187 : vector<2x1xf32>
    %189 = math.rsqrt %188 : vector<2x1xf32>
    %190 = vector.broadcast %189 : vector<2x1xf32> to vector<2x256xf32>
    %191 = arith.mulf %186, %190 : vector<2x256xf32>
    %cst_119 = arith.constant 0.000000e+00 : f32
    %192 = vector.broadcast %cst_119 : f32 to vector<2x256xf32>
    %193 = arith.cmpf ogt, %191, %192 : vector<2x256xf32>
    %cst_120 = arith.constant 0.00999999977 : f32
    %194 = vector.broadcast %cst_120 : f32 to vector<2x256xf32>
    %195 = arith.mulf %194, %191 : vector<2x256xf32>
    %196 = arith.select %193, %191, %195 : vector<2x256xi1>, vector<2x256xf32>
    %c0_121 = arith.constant 0 : index
    %c0_122 = arith.constant 0 : index
    %197 = vector.load %arg12[%c0_121, %c0_122] : memref<1x2xf32, #tpu.memory_space<vmem>>, vector<1x2xf32>
    %cst_123 = arith.constant dense<0.000000e+00> : vector<1x256xf32>
    %198 = tpu.matmul %197, %196, %cst_123 {dimension_numbers = #tpu.dot_dimension_numbers<[1], [0], [0], [1], [0, 0, 1, 1], [], []>} : vector<1x2xf32>, vector<2x256xf32>, vector<1x256xf32> -> vector<1x256xf32>
    %c0_124 = arith.constant 0 : index
    %c0_125 = arith.constant 0 : index
    %199 = vector.load %arg13[%c0_124, %c0_125] : memref<1x1xf32, #tpu.memory_space<vmem>>, vector<1x1xf32>
    %200 = vector.broadcast %199 : vector<1x1xf32> to vector<1x256xf32>
    %201 = arith.addf %198, %200 : vector<1x256xf32>
    %202 = vector.broadcast %22 : vector<32x1xf32> to vector<32x256xf32>
    %203 = vector.broadcast %201 : vector<1x256xf32> to vector<32x256xf32>
    %204 = arith.mulf %202, %203 : vector<32x256xf32>
    %205 = arith.negf %204 : vector<32x256xf32>
    %206 = math.exp %205 : vector<32x256xf32>
    %cst_126 = arith.constant 1.000000e+00 : f32
    %207 = vector.broadcast %cst_126 : f32 to vector<32x256xf32>
    %208 = arith.addf %207, %206 : vector<32x256xf32>
    %209 = arith.divf %207, %208 : vector<32x256xf32>
    %cst_127 = arith.constant 1.000000e+00 : f32
    %210 = vector.broadcast %cst_127 : f32 to vector<32x256xf32>
    %211 = arith.addf %210, %209 : vector<32x256xf32>
    %212 = arith.mulf %1, %211 : vector<32x256xf32>
    %c0_128 = arith.constant 0 : index
    %c0_129 = arith.constant 0 : index
    %c0_130 = arith.constant 0 : index
    %213 = vector.load %arg15[%c0_128, %c0_129, %c0_130] : memref<1x32x256xf32, #tpu.memory_space<vmem>>, vector<1x32x256xf32>
    %214 = vector.shape_cast %213 : vector<1x32x256xf32> to vector<32x256xf32>
    %215 = vector.shape_cast %212 : vector<32x256xf32> to vector<1x32x256xf32>
    tpu.vector_store %arg15[%c0_128, %c0_129, %c0_130], %215 {strides = array<i32>} : memref<1x32x256xf32, #tpu.memory_space<vmem>>, vector<1x32x256xf32>,
    return
  }
  func.func @transform_0(%arg0: i32) -> (i32, i32, i32) {
    %c0_i32 = arith.constant 0 : i32
    %c0_i32_0 = arith.constant 0 : i32
    %c0_i32_1 = arith.constant 0 : i32
    return %arg0, %c0_i32, %c0_i32_0 : i32, i32, i32
  }
  func.func @transform_1(%arg0: i32) -> (i32, i32) {
    %c0_i32 = arith.constant 0 : i32
    %c0_i32_0 = arith.constant 0 : i32
    %c0_i32_1 = arith.constant 0 : i32
    return %c0_i32, %c0_i32_0 : i32, i32
  }
  func.func @transform_2(%arg0: i32) -> (i32, i32) {
    %c0_i32 = arith.constant 0 : i32
    %c0_i32_0 = arith.constant 0 : i32
    %c0_i32_1 = arith.constant 0 : i32
    return %c0_i32, %c0_i32_0 : i32, i32
  }
  func.func @transform_3(%arg0: i32) -> (i32, i32) {
    %c0_i32 = arith.constant 0 : i32
    %c0_i32_0 = arith.constant 0 : i32
    %c0_i32_1 = arith.constant 0 : i32
    return %c0_i32, %c0_i32_0 : i32, i32
  }
  func.func @transform_4(%arg0: i32) -> (i32, i32) {
    %c0_i32 = arith.constant 0 : i32
    %c0_i32_0 = arith.constant 0 : i32
    %c0_i32_1 = arith.constant 0 : i32
    return %c0_i32, %c0_i32_0 : i32, i32
  }
  func.func @transform_5(%arg0: i32) -> (i32, i32) {
    %c0_i32 = arith.constant 0 : i32
    %c0_i32_0 = arith.constant 0 : i32
    %c0_i32_1 = arith.constant 0 : i32
    return %c0_i32, %c0_i32_0 : i32, i32
  }
  func.func @transform_6(%arg0: i32) -> (i32, i32) {
    %c0_i32 = arith.constant 0 : i32
    %c0_i32_0 = arith.constant 0 : i32
    %c0_i32_1 = arith.constant 0 : i32
    return %c0_i32, %c0_i32_0 : i32, i32
  }
  func.func @transform_7(%arg0: i32) -> (i32, i32) {
    %c0_i32 = arith.constant 0 : i32
    %c0_i32_0 = arith.constant 0 : i32
    %c0_i32_1 = arith.constant 0 : i32
    return %c0_i32, %c0_i32_0 : i32, i32
  }
  func.func @transform_8(%arg0: i32) -> (i32, i32) {
    %c0_i32 = arith.constant 0 : i32
    %c0_i32_0 = arith.constant 0 : i32
    %c0_i32_1 = arith.constant 0 : i32
    return %c0_i32, %c0_i32_0 : i32, i32
  }
  func.func @transform_9(%arg0: i32) -> (i32, i32) {
    %c0_i32 = arith.constant 0 : i32
    %c0_i32_0 = arith.constant 0 : i32
    %c0_i32_1 = arith.constant 0 : i32
    return %c0_i32, %c0_i32_0 : i32, i32
  }
  func.func @transform_10(%arg0: i32) -> (i32, i32) {
    %c0_i32 = arith.constant 0 : i32
    %c0_i32_0 = arith.constant 0 : i32
    %c0_i32_1 = arith.constant 0 : i32
    return %c0_i32, %c0_i32_0 : i32, i32
  }
  func.func @transform_11(%arg0: i32) -> (i32, i32) {
    %c0_i32 = arith.constant 0 : i32
    %c0_i32_0 = arith.constant 0 : i32
    %c0_i32_1 = arith.constant 0 : i32
    return %c0_i32, %c0_i32_0 : i32, i32
  }
  func.func @transform_12(%arg0: i32) -> (i32, i32) {
    %c0_i32 = arith.constant 0 : i32
    %c0_i32_0 = arith.constant 0 : i32
    %c0_i32_1 = arith.constant 0 : i32
    return %c0_i32, %c0_i32_0 : i32, i32
  }
  func.func @transform_13(%arg0: i32) -> (i32, i32) {
    %c0_i32 = arith.constant 0 : i32
    %c0_i32_0 = arith.constant 0 : i32
    %c0_i32_1 = arith.constant 0 : i32
    return %c0_i32, %c0_i32_0 : i32, i32
  }
  func.func @transform_14(%arg0: i32) -> (i32, i32, i32) {
    %c0_i32 = arith.constant 0 : i32
    %c0_i32_0 = arith.constant 0 : i32
    %c0_i32_1 = arith.constant 0 : i32
    return %arg0, %c0_i32, %c0_i32_0 : i32, i32, i32
  }
}

</mosaic_0001>

<bundles_post_ra>
// kernel: tpu_custom_call.1
= control target key start
LH: loop header
LB: loop body
LE: loop exit
PB: predicated region body
PF: predicated region fallthrough
CT: control target
= control target key end

     0   :  { %s2420_s0 = inlined_call_operand.hbm [shape: f32[2,32,256], index: 0, kind: input, shape index: {}]   ;;  %s2421_s1 = inlined_call_operand.vmem [shape: f32[32,2], index: 1, kind: input, shape index: {}]   ;;  %s2422_s2 = inlined_call_operand.vmem [shape: f32[1,2], index: 2, kind: input, shape index: {}]   ;;  %s2423_s3 = inlined_call_operand.vmem [shape: f32[32,2], index: 3, kind: input, shape index: {}]   ;;  %s2424_s4 = inlined_call_operand.vmem [shape: f32[32,1], index: 4, kind: input, shape index: {}]   ;;  %s2425_s5 = inlined_call_operand.vmem [shape: f32[2,32], index: 5, kind: input, shape index: {}]   ;;  %s2426_s6 = inlined_call_operand.vmem [shape: f32[2,1], index: 6, kind: input, shape index: {}]   ;;  %s2427_s7 = inlined_call_operand.vmem [shape: f32[2,18], index: 7, kind: input, shape index: {}]   ;;  %s2428_s8 = inlined_call_operand.vmem [shape: f32[2,1], index: 8, kind: input, shape index: {}]   ;;  %s2429_s9 = inlined_call_operand.vmem [shape: f32[2,18], index: 9, kind: input, shape index: {}]   ;;  %s2430_s10 = inlined_call_operand.vmem [shape: f32[2,1], index: 10, kind: input, shape index: {}]   ;;  %s2431_s11 = inlined_call_operand.vmem [shape: f32[1,2], index: 11, kind: input, shape index: {}]   ;;  %s2432_s12 = inlined_call_operand.<no memory space> [shape: f32[1,1], index: 12, kind: input, shape index: {}]   ;;  %s2433_s13 = inlined_call_operand.vmem [shape: f32[9,256], index: 13, kind: input, shape index: {}]   ;;  %s2434_s14 = inlined_call_operand.hbm [shape: f32[2,32,256], index: 14, kind: output, shape index: {}]  }
   0x1   :  { %2443 = sst [smem:[#allocation15_spill]] %s2434_s14  ;;  %v19_v0 = vstv %s2432_s12 }
   0x2   :  { %20 = vst [vmem:[#allocation3] sm:$0x1] %v19_v0 }
   0x3   :  { %21 = vsyncpa [#allocation5], 0 }
   0x4   :  { %23 = vsyncpa [#allocation5 + $0x1], 0 }
   0x5   :  { %24 = vsyncpa [#allocation6], 0 }
   0x6   :  { %26 = vsyncpa [#allocation6 + $0x1], 0  ;;  %s1953_s15 = smov 0   ;;  %s1955_s16 = smov 0  }
   0x7   :  { %s1957_s17 = smov 0   ;;  %s1959_s18 = smov 0  }
   0x8 LB: > { %2444 = sst [smem:[#allocation10_spill]] %s1848_s15  ;;  %s1974_s12 = sadd.s32 4294967295, %s1860_s18   ;;  %s1860_s18 = sphi %s1959_s18, %s2461_s18   ;;  %s1856_s17 = sphi %s1957_s17, %s2463_s17   ;;  %s1852_s16 = sphi %s1955_s16, %s2465_s16   ;;  %s1848_s15 = sphi %s1953_s15, %s2464_s15  }
   0x9   : > { %2445 = sst [smem:[#allocation11_spill]] %s1856_s17  ;;  %s1617_s19 = sadd.s32 4294967294, %s1860_s18  }
   0xa   : > { %s1978_s20 = sadd.s32 1, %s1860_s18   ;;  %s39_s21 = sadd.s32 1, %s1856_s17 }
   0xb   : > { %2446 = sst [smem:[#allocation12_spill]] %s1978_s20  ;;  %s36_s22 = ssub.s32 %s1860_s18, %s1978_s20 }
   0xc   : > { %p46_p0 = scmp.ne.s32.totalorder %s1856_s17, %s1852_s16  ;;  %p37_p1 = scmp.eq.s32.totalorder %s36_s22, 0 }
   0xd   : > { %p47_p2 = scmp.eq.s32.totalorder %s1860_s18, 0  ;;  %p52_p3 = scmp.ne.s32.totalorder %s1852_s16, %s1848_s15 }
   0xe   : > { %p53_p4 = scmp.eq.s32.totalorder %s1974_s12, 0  ;;  %p349_p7 = scmp.eq.s32.totalorder %s1974_s12, 1 }
   0xf   : > { %s1990_s23 = scalar_select %p37_p1, %s1856_s17, %s39_s21  }
  0x10   : > { %p1992_p5 = por %p47_p2, %p46_p0  ;;  %p1996_p6 = por %p53_p4, %p52_p3 }
  0x11   : > { %2447 = sst [smem:[#allocation13_spill]] %s1990_s23  ;;  %p355_p8 = scmp.eq.s32.totalorder %s1617_s19, 1 }
  0x12   : > { %s2449_s25 = scalar_select %p1996_p6, 1, 0 }
  0x13   : > { %p1677_p10 = scmp.lt.s32.totalorder %s1860_s18, 2  ;;  %p2003_p11 = por %p349_p7, %p46_p0 }
  0x14   : > { %p2007_p12 = por %p355_p8, %p52_p3  ;;  %s414_s28 = sand.u32 1, %s1856_s17  }
  0x15   : > { %s2450_s26 = scalar_select %p2003_p11, 1, 0 }
  0x16   : > { %s2451_s27 = scalar_select %p2007_p12, 1, 0 }
  0x17   : > { %s1663_s29 = sshll.u32 %s1860_s18, 10  ;;  %s1620_s30 = sshll.u32 %s414_s28, 6 }
  0x18   : > { %2452 = sst [smem:[#allocation14_spill]] %s2451_s27  ;;  %s2016_s23 = scalar_lea.hbm %s2420_s0, %s1663_s29 }
  0x19   : > { %s418_s19 = scalar_lea.vmem [#allocation4], %s1620_s30  ;;  %p2020_p13 = pnand %p1677_p10, %p1992_p5 }
  0x1a   : > { %s425_s20 = sshll.u32 %s418_s19, 4  ;;  %s2026_s17 = scalar_lea.sflag [#allocation5], %s414_s28  ;;  %s2024_s20 = int_to_ptr.vmem [resolvable:$true] %s425_s20 }
  0x1b   : > { %s1768_s27 = scalar_lea.hbm %s2016_s23, 1024  ;;  %p1770_p1 = pneg %p2020_p13 }
  0x1c   : > { %p1769_p0 = scmp.ne.s32.totalorder %s2016_s23, %s1768_s27  ;;  %s1773_s30 = scalar_lea.hbm %s2420_s0, 2048 }
  0x1d   : > { %p1774_p4 = scmp.lt.s32.totalorder %s2016_s23, %s2420_s0  ;;  %p1775_p5 = scmp.lt.s32.totalorder %s1773_s30, %s1768_s27 }
  0x1e   : > { %p1771_p2 = pnand %p1770_p1, %p1769_p0 }
  0x1f   : > { %p1776_p7 = por %p1775_p5, %p1774_p4 }
  0x20   : > { %p1772_p3 = pneg %p1771_p2 }
  0x22   : > { %p1777_p8 = pnand %p1776_p7, %p1772_p3 }
  0x24   : > { %1780 = shalt.err (!%p1777_p8)
}
  0x25   : > { %s1781_s28 = scalar_lea.vmem %s2024_s20, 1024  ;;  %s1862_s19 = smov [#allocation4]  }
  0x26   : > { %p1782_p10 = scmp.ne.s32.totalorder %s2024_s20, %s1781_s28  ;;  %s1786_s14 = sshll.u32 %s1862_s19, 4  ;;  %s1787_s14 = int_to_ptr.vmem [resolvable:$false] %s1786_s14 }
  0x27   : > { %s1788_s29 = scalar_lea.vmem %s1787_s14, 2048  ;;  %p1789_p2 = scmp.lt.s32.totalorder %s2024_s20, %s1787_s14 }
  0x28   : > { %p1784_p9 = pnand %p1782_p10, %p1770_p1  ;;  %p1790_p12 = scmp.lt.s32.totalorder %s1788_s29, %s1781_s28 }
  0x2a   : > { %p1785_p0 = pneg %p1784_p9  ;;  %p1791_p11 = por %p1790_p12, %p1789_p2 }
  0x2c   : > { %p1792_p6 = pnand %p1791_p11, %p1785_p0 }
  0x2e   : > { %1795 = shalt.err (!%p1792_p6)
}
  0x2f   : > { %s1863_s27 = smov 256   ;;  %s1864_s21 = smov 16  }
  0x30   : > { %1672 = dma.hbm_to_vmem [thread:$0]  (!%p2020_p13), %s2016_s23, 1024, %s2024_s20, %s2026_s17, %s1863_s27, %s1863_s27, %s1864_s21  }
  0x31   : > { %p1623_p9 = scmp.ge.s32.totalorder %s1860_s18, 1  ;;  %p433_p1 = scmp.lt.s32.totalorder %s1860_s18, 3 }
  0x33   : > { %p434_p3 = pnand %p1623_p9, %p433_p1 }
  0x34   : > { %s2050_s14 = sand.u32 (!%p434_p3), 1, %s1852_s16   ;;  %p2454_p6 = scmp.ne.s32.totalorder (!%p434_p3), %s2449_s25, 0 }
  0x35   : > { %437 = sbr.rel (%p434_p3) target bundleno = 1814 (0x716), region = 76  ;;  %s1624_s30 = sshll.u32 (!%p434_p3), %s2050_s14, 6 }
  0x36   : > { %s440_s24 = scalar_lea.sflag (!%p434_p3), [#allocation5], %s2050_s14  ;;  %s2056_s22 = scalar_lea.vmem (!%p434_p3), [#allocation4], %s1624_s30 }
  0x3a   : > { %1839 = dma.done.wait (%p2454_p6), %s440_s24, 1024  }
  0x3b   : > { %1841 = vsyncadd (%p2454_p6), %s440_s24, 4294966272  ;;  %v1865_v1 = vmov 0.0   ;;  %v1866_v2 = vmov 0   ;;  %v2065_v3 = vld [vmem:[%s2056_s22 + $0x38] sm:$0xff]  ;;  %v2068_v4 = vld [vmem:[%s2056_s22 + $0x30] sm:$0xff]  ;;  %vm574_vm0 = vcmask 261120   ;;  %v539_v44 = vlaneseq }
  0x3c   : > { %642 = vmatprep.mubr.f32.mxu0 %v1865_v1  ;;  %1722 = vset.pattern.permute.xlu0 %v1866_v2  ;;  %v2071_v5 = vld [vmem:[%s2056_s22 + $0x28] sm:$0xff]  ;;  %v2075_v6 = vld [vmem:[%s2056_s22 + $0x20] sm:$0xff]  ;;  %v2079_v7 = vld [vmem:[%s2056_s22 + $0x18] sm:$0xff]  ;;  %vm649_vm1 = vcmask 1041408   ;;  %s1867_s25 = smov 60   ;;  %s1868_s28 = smov 68  }
  0x3d   : > { %977 = vmatprep.mubr.f32.mxu1 %v1865_v1  ;;  %1723 = vset.pattern.permute.xlu1 %v1866_v2  ;;  %v2083_v8 = vld [vmem:[%s2056_s22 + $0x10] sm:$0xff]  ;;  %v2090_v10 = vld [vmem:[%s2056_s22 + $0x8] sm:$0xff]  ;;  %v2094_v11 = vld [vmem:[%s2056_s22] sm:$0xff]  ;;  %s1869_s19 = smov 64   ;;  %s1870_s29 = smov 124   ;;  %v540_v45 = vshrl.u32 %v539_v44, 7 }
  0x3e   : > { %602 = vmatprep.subr.mxu0 %v2065_v3  ;;  %v568_v9 = vld [vmem:[%s2426_s6] sm:$0x3]  ;;  %s1871_s27 = smov 4   ;;  %v2120_v46 = vand.u32 127, %v539_v44  ;;  %vm903_vm9 = vcmask 146432   ;;  %vm516_vm12 = vcmask 15360  }
  0x3f   : > { %603 = vmatpush1.msra.mxu0 %v2068_v4  ;;  %571 = vperm.xlu0 %1722, %v568_v9   ;;  %v567_v12 = vld [vmem:[%s2425_s5] sm:$0x3]  ;;  %v2122_v47 = vsub.s32 0, %v540_v45  ;;  %v2124_v48 = vsub.s32 1, %v540_v45  ;;  %s2455_s21 = sld [smem:[#allocation15_spill]]  ;;  %p2456_p12 = scmp.ne.s32.totalorder %s2450_s26, 0 }
  0x40   : > { %604 = vmatprep.subr.mxu0 %v2071_v5  ;;  %v897_v43 = vld [vmem:[%s2428_s8] sm:$0x3]  ;;  %v1631_v50 = vld [vmem:[%s2433_s13 + $0x6] ss:$8 sm:$0x3]  ;;  %vm686_vm4 = vcmp.lt.s32.totalorder %v2120_v46, 68 }
  0x41   : > { %605 = vmatpush1.msra.mxu0 %v2075_v6  ;;  %v689_v49 = vld [vmem:[%s2433_s13] ss:$8 sm:$0x3]  ;;  %v833_v54 = vrot.slane %v1631_v50, %v2122_v47  ;;  %v837_v55 = vrot.slane %v1631_v50, %v2124_v48  ;;  %v1627_v63 = vld [vmem:[%s2433_s13 + $0x1] ss:$8 sm:$0x3] }
  0x42   : > { %606 = vmatprep.subr.mxu0 %v2079_v7  ;;  %v694_v52 = vrot.slane %v689_v49, %v2122_v47  ;;  %v698_v53 = vrot.slane %v689_v49, %v2124_v48  ;;  %v1632_v0 = vld [vmem:[%s2433_s13 + $0x7] ss:$8 sm:$0x3]  ;;  %vm709_vm5 = vcmp.lt.s32.totalorder %v2120_v46, 64  ;;  %vm739_vm6 = vcmp.lt.s32.totalorder %v2120_v46, 60  ;;  %s1872_s15 = smov [#allocation7]  }
  0x43   : > { %607 = vmatpush1.msra.mxu0 %v2083_v8  ;;  %vm801_vm7 = vcmp.lt.s32.totalorder %v2120_v46, 124  ;;  %vm769_vm8 = vcmp.lt.s32.totalorder %v2120_v46, 4  ;;  %s1800_s17 = sshll.u32 %s1872_s15, 4  ;;  %s1801_s17 = int_to_ptr.vmem [resolvable:$false] %s1800_s17 }
  0x44   : > { %608 = vmatprep.subr.mxu0 %v2090_v10 }
  0x45   : > { %609 = vmatpush1.msra.mxu0 %v2094_v11 }
  0x46   : > { %1626 = vmatmul.mubr.msk.f32.vlgmr.msra.gmra.mxu0 %vm574_vm0, %v567_v12 }
  0x47   : > { %1415 = vmatprep.mubr.f32.mxu0 %v1865_v1 }
  0xba   : > { %v572_v13 = vpop.permute.xlu0 %571 }
 0x106   : > { %v644_v14 = vpop.f32.mrf.mxu0 }
 0x107   : > { %v645_v15 = vadd.f32 %v644_v14, %v572_v13  ;;  %v718_v14 = vrot.slane %v1627_v63, %v2122_v47 }
 0x108   : > { %v646_v16 = vpop.f32.mrf.mxu0 }
 0x109   : > { %v647_v17 = vadd.f32 %v646_v16, %v572_v13  ;;  %v657_v18 = vmul.f32 %v645_v15, %v645_v15  ;;  %v650_v19 = vsel %vm649_vm1, %v645_v15, 0.0  ;;  %v1628_v13 = vld [vmem:[%s2433_s13 + $0x2] ss:$8 sm:$0x3]  ;;  %v856_v16 = vrot.slane %v1632_v0, %v2122_v47 }
 0x10b   : > { %v651_v20 = vsel %vm649_vm1, %v647_v17, 0.0  ;;  %v658_v21 = vmul.f32 %v647_v17, %v647_v17  ;;  %v659_v23 = vsel %vm649_vm1, %v657_v18, 0.0  ;;  %v1633_v18 = vld [vmem:[%s2433_s13 + $0x10] ss:$8 sm:$0x3] }
 0x10c   : > { %v652_v22 = vadd.f32 %v651_v20, %v650_v19  ;;  %v748_v20 = vrot.slane %v1628_v13, %v2122_v47 }
 0x10d   : > { %v660_v24 = vsel %vm649_vm1, %v658_v21, 0.0  ;;  %v752_v21 = vrot.slane %v1628_v13, %v2124_v48 }
 0x10e   : > { %653 = vadd.xlane.f32.xlu0 %v652_v22  ;;  %v661_v25 = vadd.f32 %v660_v24, %v659_v23  ;;  %v879_v24 = vrot.slane %v1633_v18, %v2122_v47 }
 0x110   : > { %662 = vadd.xlane.f32.xlu1 %v661_v25  ;;  %v883_v25 = vrot.slane %v1633_v18, %v2124_v48 }
 0x197   : > { %v654_v26 = vpop.xlane.xlu0 %653 }
 0x198   : > { %v656_v27 = vmul.f32 0.00390625, %v654_v26 }
 0x199   : > { %v663_v28 = vpop.xlane.xlu1 %662 }
 0x19a   : > { %v664_v29 = vmul.f32 0.00390625, %v663_v28  ;;  %v665_v30 = vmul.f32 %v656_v27, %v656_v27  ;;  %v668_v34 = vsub.f32 %v645_v15, %v656_v27  ;;  %v669_v35 = vsub.f32 %v647_v17, %v656_v27 }
 0x19b   : > { %v722_v15 = vrot.slane %v1627_v63, %v2124_v48  ;;  %v860_v17 = vrot.slane %v1632_v0, %v2124_v48 }
 0x19c   : > { %v666_v31 = vsub.f32 %v664_v29, %v665_v30 }
 0x19e   : > { %v667_v32 = vmax.f32 %v666_v31, 0.0 }
 0x1a0   : > { %v670_v33 = vadd.f32 1e-05, %v667_v32 }
 0x1a2   : > { %1724 = vrsqrt.f32 %v670_v33 }
 0x1af   : > { %v1725_v36 = vpop.eup %1724 }
 0x1b0   : > { %v673_v37 = vmul.f32 %v1725_v36, %v669_v35  ;;  %v672_v38 = vmul.f32 %v1725_v36, %v668_v34 }
 0x1b2   : > { %vm675_vm2 = vcmp.gt.f32.partialorder %v673_v37, 0.0  ;;  %v677_v39 = vmul.f32 0.01, %v673_v37  ;;  %vm674_vm3 = vcmp.gt.f32.partialorder %v672_v38, 0.0  ;;  %v676_v40 = vmul.f32 0.01, %v672_v38 }
 0x1b4   : > { %v679_v41 = vsel %vm675_vm2, %v673_v37, %v677_v39  ;;  %v678_v42 = vsel %vm674_vm3, %v672_v38, %v676_v40 }
 0x1b5   : > { %737 = vrot.lane.b32.xlu0 %v679_v41, %s1867_s25  ;;  %796 = vst [vmem:[#allocation2] sm:$0x3] %v679_v41  ;;  %680 = vrot.lane.b32.xlu1 %v678_v42, %s1868_s28  ;;  %795 = vst [vmem:[#allocation2 + $0x8] sm:$0x3] %v678_v42 }
 0x1b9   : > { %682 = vrot.lane.b32.xlu1 %v679_v41, %s1868_s28 }
 0x1bd   : > { %705 = vrot.lane.b32.xlu1 %v678_v42, %s1869_s19 }
 0x1c1   : > { %707 = vrot.lane.b32.xlu1 %v679_v41, %s1869_s19 }
 0x1c5   : > { %735 = vrot.lane.b32.xlu1 %v678_v42, %s1867_s25 }
 0x1c9   : > { %797 = vrot.lane.b32.xlu1 %v678_v42, %s1870_s29 }
 0x1cd   : > { %799 = vrot.lane.b32.xlu1 %v679_v41, %s1870_s29 }
 0x1d1   : > { %765 = vrot.lane.b32.xlu1 %v678_v42, %s1871_s27  ;;  %v1630_v42 = vld [vmem:[%s2433_s13 + $0x5] ss:$8 sm:$0x3] }
 0x1d2   : > { %v810_v49 = vrot.slane %v1630_v42, %v2122_v47  ;;  %v814_v50 = vrot.slane %v1630_v42, %v2124_v48 }
 0x1d5   : > { %767 = vrot.lane.b32.xlu1 %v679_v41, %s1871_s27 }
 0x1d9   : > { %900 = vperm.xlu1 %1723, %v897_v43  }
 0x227   : > { %v681_v51 = vpop.permute.xlu1 %680  ;;  %v738_v30 = vpop.permute.xlu0 %737 }
 0x22b   : > { %v683_v56 = vpop.permute.xlu1 %682 }
 0x22c   : > { %v687_v57 = vsel %vm686_vm4, %v681_v51, %v683_v56  ;;  %v688_v58 = vsel %vm686_vm4, %v683_v56, %v681_v51  ;;  %v1629_v56 = vld [vmem:[%s2433_s13 + $0x3] ss:$8 sm:$0x3] }
 0x22d   : > { %v701_v59 = vmul.f32 %v694_v52, %v688_v58  ;;  %v702_v60 = vmul.f32 %v698_v53, %v687_v57  ;;  %v840_v61 = vmul.f32 %v833_v54, %v687_v57  ;;  %v841_v62 = vmul.f32 %v837_v55, %v688_v58 }
 0x22e   : > { %v782_v63 = vrot.slane %v1629_v56, %v2124_v48 }
 0x22f   : > { %703 = vst [vmem:[#allocation2 + $0x28] sm:$0x3] %v701_v59  ;;  %704 = vst [vmem:[#allocation2 + $0x10] sm:$0x3] %v702_v60  ;;  %v844_v2 = vrot.slane %v840_v61, 4  ;;  %v845_v9 = vrot.slane %v841_v62, 4  ;;  %v706_v12 = vpop.permute.xlu1 %705  ;;  %v778_v62 = vrot.slane %v1629_v56, %v2122_v47 }
 0x230   : > { %v1637_v56 = vld [vmem:[%s2433_s13 + $0x1] ss:$8 sm:$0x3] }
 0x231   : > { %848 = vst [vmem:[#allocation2 + $0x8] sm:$0x30] %v844_v2  ;;  %849 = vst [vmem:[#allocation2] sm:$0x30] %v845_v9 }
 0x233   : > { %v708_v19 = vpop.permute.xlu1 %707 }
 0x234   : > { %v710_v22 = vsel %vm709_vm5, %v706_v12, %v708_v19  ;;  %v711_v23 = vsel %vm709_vm5, %v708_v19, %v706_v12 }
 0x235   : > { %v725_v26 = vmul.f32 %v718_v14, %v711_v23  ;;  %v726_v27 = vmul.f32 %v722_v15, %v710_v22  ;;  %v863_v28 = vmul.f32 %v856_v16, %v710_v22  ;;  %v864_v29 = vmul.f32 %v860_v17, %v711_v23 }
 0x237   : > { %v729_v31 = vrot.slane %v725_v26, 6  ;;  %v730_v32 = vrot.slane %v726_v27, 6  ;;  %v867_v33 = vrot.slane %v863_v28, 2  ;;  %v868_v34 = vrot.slane %v864_v29, 2  ;;  %v736_v35 = vpop.permute.xlu1 %735 }
 0x238   : > { %v740_v36 = vsel %vm739_vm6, %v736_v35, %v738_v30  ;;  %v741_v37 = vsel %vm739_vm6, %v738_v30, %v736_v35 }
 0x239   : > { %733 = vst [vmem:[#allocation2 + $0x28] sm:$0xc] %v729_v31  ;;  %734 = vst [vmem:[#allocation2 + $0x10] sm:$0xc] %v730_v32  ;;  %v755_v38 = vmul.f32 %v748_v20, %v741_v37  ;;  %v756_v39 = vmul.f32 %v752_v21, %v740_v36  ;;  %v886_v40 = vmul.f32 %v879_v24, %v740_v36  ;;  %v890_v20 = vld [vmem:[%s2427_s7] sm:$0x3] }
 0x23a   : > { %871 = vst [vmem:[#allocation2 + $0x8] sm:$0xc0] %v867_v33  ;;  %872 = vst [vmem:[#allocation2] sm:$0xc0] %v868_v34  ;;  %v887_v41 = vmul.f32 %v883_v25, %v741_v37 }
 0x23b   : > { %v759_v43 = vrot.slane %v755_v38, 4  ;;  %v760_v44 = vrot.slane %v756_v39, 4  ;;  %888 = vst [vmem:[#allocation2 + $0x18] sm:$0x3] %v886_v40  ;;  %v798_v45 = vpop.permute.xlu1 %797 }
 0x23c   : > { %889 = vst [vmem:[#allocation2 + $0x20] sm:$0x3] %v887_v41 }
 0x23d   : > { %763 = vst [vmem:[#allocation2 + $0x28] sm:$0x30] %v759_v43  ;;  %764 = vst [vmem:[#allocation2 + $0x10] sm:$0x30] %v760_v44 }
 0x23f   : > { %v800_v51 = vpop.permute.xlu1 %799 }
 0x240   : > { %v802_v52 = vsel %vm801_vm7, %v798_v45, %v800_v51  ;;  %v803_v53 = vsel %vm801_vm7, %v800_v51, %v798_v45 }
 0x241   : > { %v817_v54 = vmul.f32 %v810_v49, %v802_v52  ;;  %v818_v55 = vmul.f32 %v814_v50, %v803_v53  ;;  %v1216_v53 = vld [vmem:[%s2430_s10] sm:$0x3] }
 0x242   : > { %v895_v58 = vld [vmem:[#allocation2 + $0x18] sm:$0x3] }
 0x243   : > { %v896_v57 = vld [vmem:[#allocation2 + $0x20] sm:$0x3]  ;;  %v821_v59 = vrot.slane %v817_v54, 6  ;;  %v822_v60 = vrot.slane %v818_v55, 6  ;;  %v766_v61 = vpop.permute.xlu1 %765 }
 0x244   : > { %1634 = vmatprep.subr.msk.mxu1 %vm649_vm1, %v896_v57  ;;  %v1019_v54 = vld [vmem:[%s2433_s13] ss:$8 sm:$0x3]  ;;  %v1641_v55 = vld [vmem:[%s2433_s13 + $0x6] ss:$8 sm:$0x3] }
 0x245   : > { %1635 = vmatpush1.msk.msra.mxu1 %vm649_vm1, %v895_v58  ;;  %825 = vst [vmem:[#allocation2 + $0x8] sm:$0xc] %v821_v59  ;;  %826 = vst [vmem:[#allocation2] sm:$0xc] %v822_v60  ;;  %v1024_v57 = vrot.slane %v1019_v54, %v2122_v47  ;;  %v1028_v58 = vrot.slane %v1019_v54, %v2124_v48  ;;  %v1154_v59 = vrot.slane %v1641_v55, %v2122_v47 }
 0x246   : > { %v1158_v60 = vrot.slane %v1641_v55, %v2124_v48 }
 0x247   : > { %v768_v0 = vpop.permute.xlu1 %767 }
 0x248   : > { %v770_v2 = vsel %vm769_vm8, %v766_v61, %v768_v0  ;;  %v771_v9 = vsel %vm769_vm8, %v768_v0, %v766_v61  ;;  %v1642_v61 = vld [vmem:[%s2433_s13 + $0x7] ss:$8 sm:$0x3]  ;;  %v1046_v0 = vrot.slane %v1637_v56, %v2122_v47 }
 0x249   : > { %v785_v12 = vmul.f32 %v778_v62, %v771_v9  ;;  %v786_v13 = vmul.f32 %v782_v63, %v770_v2  ;;  %v1050_v2 = vrot.slane %v1637_v56, %v2124_v48 }
 0x24b   : > { %v789_v14 = vrot.slane %v785_v12, 2  ;;  %v790_v15 = vrot.slane %v786_v13, 2  ;;  %v1176_v13 = vrot.slane %v1642_v61, %v2122_v47 }
 0x24c   : > { %v894_v16 = vld [vmem:[#allocation2] sm:$0xff]  ;;  %v893_v17 = vld [vmem:[#allocation2 + $0x8] sm:$0xff] }
 0x24d   : > { %793 = vst [vmem:[#allocation2 + $0x28] sm:$0xc0] %v789_v14  ;;  %794 = vst [vmem:[#allocation2 + $0x10] sm:$0xc0] %v790_v15  ;;  %941 = vmatprep.subr.mxu1 %v894_v16  ;;  %v1180_v14 = vrot.slane %v1642_v61, %v2124_v48 }
 0x24e   : > { %942 = vmatpush1.msra.mxu1 %v893_v17  ;;  %v1638_v15 = vld [vmem:[%s2433_s13 + $0x2] ss:$8 sm:$0x3] }
 0x254   : > { %v892_v18 = vld [vmem:[#allocation2 + $0x10] sm:$0xff]  ;;  %v891_v19 = vld [vmem:[#allocation2 + $0x28] sm:$0xff]  ;;  %v901_v21 = vpop.permute.xlu1 %900 }
 0x255   : > { %943 = vmatprep.subr.mxu1 %v892_v18 }
 0x256   : > { %944 = vmatpush1.msra.mxu1 %v891_v19 }
 0x257   : > { %1636 = vmatmul.mubr.msk.f32.vlgmr.msra.gmra.mxu1 %vm903_vm9, %v890_v20  ;;  %v1643_v20 = vld [vmem:[%s2433_s13 + $0x10] ss:$8 sm:$0x3] }
 0x258   : > { %1295 = vmatprep.mubr.f32.mxu1 %v1865_v1 }
 0x317   : > { %v979_v22 = vpop.f32.mrf.mxu1 }
 0x318   : > { %v980_v23 = vadd.f32 %v979_v22, %v901_v21 }
 0x319   : > { %v981_v24 = vpop.f32.mrf.mxu1 }
 0x31a   : > { %v982_v25 = vadd.f32 %v981_v24, %v901_v21  ;;  %v990_v26 = vmul.f32 %v980_v23, %v980_v23  ;;  %v984_v27 = vsel %vm649_vm1, %v980_v23, 0.0 }
 0x31c   : > { %v985_v28 = vsel %vm649_vm1, %v982_v25, 0.0  ;;  %v991_v29 = vmul.f32 %v982_v25, %v982_v25  ;;  %v992_v31 = vsel %vm649_vm1, %v990_v26, 0.0  ;;  %v1078_v26 = vrot.slane %v1638_v15, %v2124_v48 }
 0x31d   : > { %v986_v30 = vadd.f32 %v985_v28, %v984_v27 }
 0x31e   : > { %v993_v32 = vsel %vm649_vm1, %v991_v29, 0.0  ;;  %v1198_v29 = vrot.slane %v1643_v20, %v2122_v47 }
 0x31f   : > { %987 = vadd.xlane.f32.xlu0 %v986_v30  ;;  %v994_v33 = vadd.f32 %v993_v32, %v992_v31  ;;  %v1202_v30 = vrot.slane %v1643_v20, %v2124_v48 }
 0x321   : > { %995 = vadd.xlane.f32.xlu1 %v994_v33 }
 0x3a8   : > { %v988_v1 = vpop.xlane.xlu0 %987 }
 0x3a9   : > { %v989_v34 = vmul.f32 0.00390625, %v988_v1 }
 0x3aa   : > { %v996_v35 = vpop.xlane.xlu1 %995 }
 0x3ab   : > { %v997_v36 = vmul.f32 0.00390625, %v996_v35  ;;  %v998_v37 = vmul.f32 %v989_v34, %v989_v34  ;;  %v1001_v41 = vsub.f32 %v980_v23, %v989_v34  ;;  %v1002_v42 = vsub.f32 %v982_v25, %v989_v34  ;;  %v1640_v34 = vld [vmem:[%s2433_s13 + $0x5] ss:$8 sm:$0x3] }
 0x3ac   : > { %v1074_v25 = vrot.slane %v1638_v15, %v2122_v47 }
 0x3ad   : > { %v999_v38 = vsub.f32 %v997_v36, %v998_v37 }
 0x3af   : > { %v1000_v39 = vmax.f32 %v999_v38, 0.0 }
 0x3b1   : > { %v1003_v40 = vadd.f32 1e-05, %v1000_v39 }
 0x3b3   : > { %1726 = vrsqrt.f32 %v1003_v40 }
 0x3c0   : > { %v1727_v43 = vpop.eup %1726 }
 0x3c1   : > { %v1006_v44 = vmul.f32 %v1727_v43, %v1002_v42  ;;  %v1005_v45 = vmul.f32 %v1727_v43, %v1001_v41  ;;  %v1132_v43 = vrot.slane %v1640_v34, %v2122_v47 }
 0x3c3   : > { %vm1008_vm10 = vcmp.gt.f32.partialorder %v1006_v44, 0.0  ;;  %v1010_v49 = vmul.f32 0.01, %v1006_v44  ;;  %vm1007_vm11 = vcmp.gt.f32.partialorder %v1005_v45, 0.0  ;;  %v1009_v50 = vmul.f32 0.01, %v1005_v45 }
 0x3c5   : > { %v1012_v51 = vsel %vm1008_vm10, %v1006_v44, %v1010_v49  ;;  %v1011_v52 = vsel %vm1007_vm11, %v1005_v45, %v1009_v50  ;;  %v1136_v44 = vrot.slane %v1640_v34, %v2124_v48 }
 0x3c6   : > { %1015 = vrot.lane.b32.xlu1 %v1012_v51, %s1868_s28  ;;  %1120 = vst [vmem:[#allocation2] sm:$0x3] %v1012_v51  ;;  %1013 = vrot.lane.b32.xlu0 %v1011_v52, %s1868_s28  ;;  %1119 = vst [vmem:[#allocation2 + $0x8] sm:$0x3] %v1011_v52  ;;  %s1802_s28 = scalar_lea.vmem %s1801_s17, 2048 }
 0x3ca   : > { %1037 = vrot.lane.b32.xlu1 %v1012_v51, %s1869_s19  ;;  %1035 = vrot.lane.b32.xlu0 %v1011_v52, %s1869_s19  ;;  %s2354_s19 = scalar_lea.vmem [#allocation7], %s1624_s30  ;;  %s1664_s30 = sshll.u32 %s1974_s12, 10 }
 0x3cb   : > { %s1544_s23 = sshll.u32 %s2354_s19, 4  ;;  %s2373_s23 = int_to_ptr.vmem [resolvable:$true] %s1544_s23 }
 0x3cc   : > { %s1796_s24 = scalar_lea.vmem %s2373_s23, 1024  ;;  %p1803_p5 = scmp.lt.s32.totalorder %s2373_s23, %s1801_s17 }
 0x3cd   : > { %p1797_p11 = scmp.ne.s32.totalorder %s2373_s23, %s1796_s24  ;;  %p1804_p7 = scmp.lt.s32.totalorder %s1802_s28, %s1796_s24 }
 0x3ce   : > { %1065 = vrot.lane.b32.xlu1 %v1012_v51, %s1867_s25  ;;  %1063 = vrot.lane.b32.xlu0 %v1011_v52, %s1867_s25 }
 0x3cf   : > { %p1798_p13 = pnand %p1797_p11, %p2456_p12  ;;  %p1805_p8 = por %p1804_p7, %p1803_p5 }
 0x3d1   : > { %p1799_p4 = pneg %p1798_p13 }
 0x3d2   : > { %1123 = vrot.lane.b32.xlu1 %v1012_v51, %s1870_s29  ;;  %1121 = vrot.lane.b32.xlu0 %v1011_v52, %s1870_s29  ;;  %s2371_s29 = scalar_lea.hbm %s2455_s21, %s1664_s30 }
 0x3d3   : > { %p1806_p10 = pnand %p1805_p8, %p1799_p4 }
 0x3d6   : > { %1093 = vrot.lane.b32.xlu1 %v1012_v51, %s1871_s27  ;;  %1091 = vrot.lane.b32.xlu0 %v1011_v52, %s1871_s27  ;;  %v1639_v52 = vld [vmem:[%s2433_s13 + $0x3] ss:$8 sm:$0x3]  ;;  %s1531_s27 = scalar_lea.sflag [#allocation6], %s2050_s14 }
 0x3d7   : > { %v1102_v61 = vrot.slane %v1639_v52, %v2122_v47 }
 0x3da   : > { %1219 = vperm.xlu0 %1722, %v1216_v53  }
 0x438   : > { %v1016_v62 = vpop.permute.xlu1 %1015  ;;  %v1014_v63 = vpop.permute.xlu0 %1013 }
 0x439   : > { %v1017_v9 = vsel %vm686_vm4, %v1014_v63, %v1016_v62  ;;  %v1018_v12 = vsel %vm686_vm4, %v1016_v62, %v1014_v63  ;;  %v1106_v62 = vrot.slane %v1639_v52, %v2124_v48 }
 0x43a   : > { %v1031_v16 = vmul.f32 %v1024_v57, %v1018_v12  ;;  %v1032_v17 = vmul.f32 %v1028_v58, %v1017_v9  ;;  %v1161_v18 = vmul.f32 %v1154_v59, %v1017_v9  ;;  %v1162_v19 = vmul.f32 %v1158_v60, %v1018_v12 }
 0x43c   : > { %1033 = vst [vmem:[#allocation2 + $0x28] sm:$0x3] %v1031_v16  ;;  %1034 = vst [vmem:[#allocation2 + $0x10] sm:$0x3] %v1032_v17  ;;  %v1165_v21 = vrot.slane %v1161_v18, 4  ;;  %v1166_v22 = vrot.slane %v1162_v19, 4  ;;  %v1038_v23 = vpop.permute.xlu1 %1037  ;;  %v1036_v24 = vpop.permute.xlu0 %1035 }
 0x43d   : > { %v1039_v27 = vsel %vm709_vm5, %v1036_v24, %v1038_v23  ;;  %v1040_v28 = vsel %vm709_vm5, %v1038_v23, %v1036_v24 }
 0x43e   : > { %1169 = vst [vmem:[#allocation2 + $0x8] sm:$0x30] %v1165_v21  ;;  %1170 = vst [vmem:[#allocation2] sm:$0x30] %v1166_v22  ;;  %v1053_v31 = vmul.f32 %v1046_v0, %v1040_v28  ;;  %v1054_v32 = vmul.f32 %v1050_v2, %v1039_v27  ;;  %v1183_v33 = vmul.f32 %v1176_v13, %v1039_v27  ;;  %v1209_v22 = vld [vmem:[%s2429_s9] sm:$0x3] }
 0x43f   : > { %v1184_v1 = vmul.f32 %v1180_v14, %v1040_v28 }
 0x440   : > { %v1057_v35 = vrot.slane %v1053_v31, 6  ;;  %v1058_v36 = vrot.slane %v1054_v32, 6  ;;  %v1187_v37 = vrot.slane %v1183_v33, 2  ;;  %v1066_v39 = vpop.permute.xlu1 %1065  ;;  %v1064_v40 = vpop.permute.xlu0 %1063 }
 0x441   : > { %v1188_v38 = vrot.slane %v1184_v1, 2  ;;  %v1067_v41 = vsel %vm739_vm6, %v1064_v40, %v1066_v39  ;;  %v1068_v42 = vsel %vm739_vm6, %v1066_v39, %v1064_v40 }
 0x442   : > { %1061 = vst [vmem:[#allocation2 + $0x28] sm:$0xc] %v1057_v35  ;;  %1062 = vst [vmem:[#allocation2 + $0x10] sm:$0xc] %v1058_v36  ;;  %v1081_v45 = vmul.f32 %v1074_v25, %v1068_v42  ;;  %v1082_v49 = vmul.f32 %v1078_v26, %v1067_v41  ;;  %v1205_v50 = vmul.f32 %v1198_v29, %v1067_v41 }
 0x443   : > { %1191 = vst [vmem:[#allocation2 + $0x8] sm:$0xc0] %v1187_v37  ;;  %1192 = vst [vmem:[#allocation2] sm:$0xc0] %v1188_v38  ;;  %v1206_v51 = vmul.f32 %v1202_v30, %v1068_v42  ;;  %v499_v35 = vadd.f32 %v2079_v7, %v2083_v8  ;;  %v496_v36 = vadd.f32 %v2090_v10, %v2094_v11  ;;  %v509_v7 = vld [vmem:[%s2421_s1 + $0x8] sm:$0xff] }
 0x444   : > { %v1085_v53 = vrot.slane %v1081_v45, 4  ;;  %v1086_v54 = vrot.slane %v1082_v49, 4  ;;  %1207 = vst [vmem:[#allocation2 + $0x18] sm:$0x3] %v1205_v50  ;;  %v1124_v55 = vpop.permute.xlu1 %1123  ;;  %v1122_v56 = vpop.permute.xlu0 %1121  ;;  %v505_v37 = vadd.f32 %v2065_v3, %v2068_v4  ;;  %v502_v38 = vadd.f32 %v2071_v5, %v2075_v6  ;;  %v508_v3 = vld [vmem:[%s2421_s1] sm:$0xff]  ;;  %v511_v6 = vld [vmem:[%s2421_s1 + $0x18] sm:$0xff] }
 0x445   : > { %1208 = vst [vmem:[#allocation2 + $0x20] sm:$0x3] %v1206_v51  ;;  %v1125_v57 = vsel %vm801_vm7, %v1122_v56, %v1124_v55  ;;  %v1126_v58 = vsel %vm801_vm7, %v1124_v55, %v1122_v56  ;;  %v510_v50 = vld [vmem:[%s2421_s1 + $0x10] sm:$0xff] }
 0x446   : > { %1089 = vst [vmem:[#allocation2 + $0x28] sm:$0x30] %v1085_v53  ;;  %1090 = vst [vmem:[#allocation2 + $0x10] sm:$0x30] %v1086_v54  ;;  %v1139_v59 = vmul.f32 %v1132_v43, %v1125_v57  ;;  %v1140_v60 = vmul.f32 %v1136_v44, %v1126_v58 }
 0x448   : > { %v1143_v63 = vrot.slane %v1139_v59, 6  ;;  %v1144_v0 = vrot.slane %v1140_v60, 6  ;;  %v1094_v2 = vpop.permute.xlu1 %1093  ;;  %v1092_v9 = vpop.permute.xlu0 %1091 }
 0x449   : > { %v1095_v12 = vsel %vm769_vm8, %v1092_v9, %v1094_v2  ;;  %v1096_v13 = vsel %vm769_vm8, %v1094_v2, %v1092_v9 }
 0x44a   : > { %1147 = vst [vmem:[#allocation2 + $0x8] sm:$0xc] %v1143_v63  ;;  %1148 = vst [vmem:[#allocation2] sm:$0xc] %v1144_v0  ;;  %v1109_v14 = vmul.f32 %v1102_v61, %v1096_v13  ;;  %v1110_v15 = vmul.f32 %v1106_v62, %v1095_v12 }
 0x44b   : > { %v1214_v17 = vld [vmem:[#allocation2 + $0x18] sm:$0x3] }
 0x44c   : > { %v1215_v16 = vld [vmem:[#allocation2 + $0x20] sm:$0x3]  ;;  %v1113_v18 = vrot.slane %v1109_v14, 2  ;;  %v1114_v19 = vrot.slane %v1110_v15, 2 }
 0x44d   : > { %1644 = vmatprep.subr.msk.mxu1 %vm649_vm1, %v1215_v16 }
 0x44e   : > { %1645 = vmatpush1.msk.msra.mxu1 %vm649_vm1, %v1214_v17  ;;  %1117 = vst [vmem:[#allocation2 + $0x28] sm:$0xc0] %v1113_v18  ;;  %1118 = vst [vmem:[#allocation2 + $0x10] sm:$0xc0] %v1114_v19  ;;  %v530_v17 = vld [vmem:[%s2422_s2] sm:$0x1] }
 0x451   : > { %v1213_v48 = vld [vmem:[#allocation2] sm:$0xff]  ;;  %v1212_v20 = vld [vmem:[#allocation2 + $0x8] sm:$0xff] }
 0x452   : > { %1259 = vmatprep.subr.mxu1 %v1213_v48 }
 0x453   : > { %1260 = vmatpush1.msra.mxu1 %v1212_v20 }
 0x455   : > { %v1211_v46 = vld [vmem:[#allocation2 + $0x10] sm:$0xff]  ;;  %v1210_v21 = vld [vmem:[#allocation2 + $0x28] sm:$0xff]  ;;  %v1220_v23 = vpop.permute.xlu0 %1219 }
 0x456   : > { %1261 = vmatprep.subr.mxu1 %v1211_v46 }
 0x457   : > { %1262 = vmatpush1.msra.mxu1 %v1210_v21 }
 0x458   : > { %1646 = vmatmul.mubr.msk.f32.vlgmr.msra.gmra.mxu1 %vm903_vm9, %v1209_v22  ;;  %v1331_v22 = vld [vmem:[%s2431_s11] sm:$0x1] }
 0x518   : > { %v1297_v24 = vpop.f32.mrf.mxu1 }
 0x519   : > { %v1298_v25 = vadd.f32 %v1297_v24, %v1220_v23 }
 0x51a   : > { %v1299_v26 = vpop.f32.mrf.mxu1 }
 0x51b   : > { %v1300_v27 = vadd.f32 %v1299_v26, %v1220_v23  ;;  %v1308_v28 = vmul.f32 %v1298_v25, %v1298_v25  ;;  %v1302_v29 = vsel %vm649_vm1, %v1298_v25, 0.0  ;;  %v536_v26 = vld [vmem:[%s2423_s3 + $0x8] sm:$0xff] }
 0x51d   : > { %v1303_v30 = vsel %vm649_vm1, %v1300_v27, 0.0  ;;  %v1309_v31 = vmul.f32 %v1300_v27, %v1300_v27  ;;  %v1310_v33 = vsel %vm649_vm1, %v1308_v28, 0.0 }
 0x51e   : > { %v1304_v32 = vadd.f32 %v1303_v30, %v1302_v29  ;;  %v538_v29 = vld [vmem:[%s2423_s3 + $0x18] sm:$0xff]  ;;  %v537_v30 = vld [vmem:[%s2423_s3 + $0x10] sm:$0xff] }
 0x51f   : > { %v1311_v1 = vsel %vm649_vm1, %v1309_v31, 0.0 }
 0x520   : > { %1305 = vadd.xlane.f32.xlu1 %v1304_v32  ;;  %v1312_v34 = vadd.f32 %v1311_v1, %v1310_v33 }
 0x522   : > { %1313 = vadd.xlane.f32.xlu0 %v1312_v34 }
 0x524   : > { %500 = vadd.xlane.f32.xlu1 %v499_v35 }
 0x526   : > { %497 = vadd.xlane.f32.xlu0 %v496_v36 }
 0x528   : > { %506 = vadd.xlane.f32.xlu1 %v505_v37 }
 0x52a   : > { %503 = vadd.xlane.f32.xlu0 %v502_v38  ;;  %v1332_v38 = vld [vmem:[#allocation3] sm:$0x1] }
 0x5a9   : > { %v1306_v39 = vpop.xlane.xlu1 %1305 }
 0x5aa   : > { %v1307_v40 = vmul.f32 0.00390625, %v1306_v39  ;;  %v559_v39 = vld [vmem:[%s2424_s4] sm:$0xff] }
 0x5ab   : > { %v1314_v41 = vpop.xlane.xlu0 %1313 }
 0x5ac   : > { %v1315_v8 = vmul.f32 0.00390625, %v1314_v41  ;;  %v1316_v42 = vmul.f32 %v1307_v40, %v1307_v40  ;;  %v1319_v9 = vsub.f32 %v1298_v25, %v1307_v40  ;;  %v1320_v12 = vsub.f32 %v1300_v27, %v1307_v40  ;;  %v535_v27 = vld [vmem:[%s2423_s3] sm:$0xff] }
 0x5ad   : > { %v501_v43 = vpop.xlane.xlu1 %500 }
 0x5ae   : > { %v1317_v4 = vsub.f32 %v1315_v8, %v1316_v42  ;;  %v513_v44 = vmul.f32 %v509_v7, %v501_v43  ;;  %v560_v8 = vld [vmem:[%s2424_s4 + $0x8] sm:$0xff]  ;;  %v561_v42 = vld [vmem:[%s2424_s4 + $0x10] sm:$0xff] }
 0x5af   : > { %v498_v5 = vpop.xlane.xlu0 %497 }
 0x5b0   : > { %v1318_v45 = vmax.f32 %v1317_v4, 0.0  ;;  %v512_v49 = vmul.f32 %v508_v3, %v498_v5  ;;  %v518_v53 = vsel %vm516_vm12, %v513_v44, 0.0  ;;  %v562_v44 = vld [vmem:[%s2424_s4 + $0x18] sm:$0xff] }
 0x5b1   : > { %v507_v51 = vpop.xlane.xlu1 %506 }
 0x5b2   : > { %v1321_v52 = vadd.f32 1e-05, %v1318_v45  ;;  %v517_v54 = vsel %vm516_vm12, %v512_v49, 0.0  ;;  %v515_v55 = vmul.f32 %v511_v6, %v507_v51 }
 0x5b3   : > { %v504_v56 = vpop.xlane.xlu0 %503  ;;  %v519_v58 = vadd.f32 %v518_v53, %v517_v54 }
 0x5b4   : > { %1728 = vrsqrt.f32 %v1321_v52  ;;  %v514_v57 = vmul.f32 %v510_v50, %v504_v56  ;;  %v522_v60 = vsel %vm516_vm12, %v515_v55, 0.0 }
 0x5b6   : > { %v520_v59 = vsel %vm516_vm12, %v514_v57, 0.0 }
 0x5b7   : > { %v521_v61 = vadd.f32 %v520_v59, %v519_v58 }
 0x5b9   : > { %v523_v62 = vadd.f32 %v522_v60, %v521_v61 }
 0x5bb   : > { %v524_v63 = vrot.slane %v523_v62, 4 }
 0x5bd   : > { %v525_v0 = vadd.f32 %v524_v63, %v523_v62 }
 0x5bf   : > { %v526_v2 = vrot.slane %v525_v0, 2 }
 0x5c1   : > { %v1729_v13 = vpop.eup %1728  ;;  %v527_v14 = vadd.f32 %v526_v2, %v525_v0 }
 0x5c2   : > { %v1324_v15 = vmul.f32 %v1729_v13, %v1320_v12  ;;  %v1323_v16 = vmul.f32 %v1729_v13, %v1319_v9 }
 0x5c3   : > { %v528_v18 = vrot.slane %v527_v14, 1 }
 0x5c4   : > { %vm1326_vm13 = vcmp.gt.f32.partialorder %v1324_v15, 0.0  ;;  %v1328_v19 = vmul.f32 0.01, %v1324_v15  ;;  %vm1325_vm14 = vcmp.gt.f32.partialorder %v1323_v16, 0.0  ;;  %v1327_v48 = vmul.f32 0.01, %v1323_v16 }
 0x5c5   : > { %v529_v20 = vadd.f32 %v528_v18, %v527_v14 }
 0x5c6   : > { %v1330_v46 = vsel %vm1326_vm13, %v1324_v15, %v1328_v19  ;;  %v1329_v21 = vsel %vm1325_vm14, %v1323_v16, %v1327_v48 }
 0x5c7   : > { %v531_v23 = vadd.f32 %v530_v17, %v529_v20  ;;  %1647 = vmatprep.subr.msk.mxu0 %vm649_vm1, %v1330_v46 }
 0x5c8   : > { %1648 = vmatpush1.msk.msra.mxu0 %vm649_vm1, %v1329_v21 }
 0x5c9   : > { %1649 = vmatmul.mubr.msk.f32.vlgmr.msra.gmra.mxu0 %vm516_vm12, %v1331_v22  ;;  %vm532_vm15 = vcmp.gt.f32.partialorder %v531_v23, 0.0  ;;  %v533_v24 = vmul.f32 0.01, %v531_v23 }
 0x5cb   : > { %v534_v25 = vsel %vm532_vm15, %v531_v23, %v533_v24 }
 0x5cc   : > { %v542_v28 = vrot.slane %v534_v25, %v2122_v47 }
 0x5ce   : > { %v544_v31 = vmul.f32 %v542_v28, %v536_v26  ;;  %v543_v32 = vmul.f32 %v542_v28, %v535_v27  ;;  %v546_v34 = vmul.f32 %v542_v28, %v538_v29  ;;  %v545_v35 = vmul.f32 %v542_v28, %v537_v30 }
 0x5d0   : > { %v550_v33 = vsel %vm516_vm12, %v544_v31, 0.0  ;;  %v547_v1 = vsel %vm516_vm12, %v543_v32, 0.0  ;;  %v556_v36 = vsel %vm516_vm12, %v546_v34, 0.0  ;;  %v553_v37 = vsel %vm516_vm12, %v545_v35, 0.0 }
 0x5d1   : > { %551 = vadd.xlane.f32.xlu1 %v550_v33  ;;  %548 = vadd.xlane.f32.xlu0 %v547_v1 }
 0x5d5   : > { %557 = vadd.xlane.f32.xlu1 %v556_v36  ;;  %554 = vadd.xlane.f32.xlu0 %v553_v37 }
 0x5eb   : > { %1335 = vperm.xlu0 %1722, %v1332_v38  }
 0x65a   : > { %v552_v40 = vpop.xlane.xlu1 %551  ;;  %v549_v41 = vpop.xlane.xlu0 %548 }
 0x65b   : > { %v563_v7 = vadd.f32 %v559_v39, %v549_v41  ;;  %v564_v3 = vadd.f32 %v560_v8, %v552_v40 }
 0x65d   : > { %1424 = vperm.xlu1 %1723, %v563_v7  }
 0x65e   : > { %v555_v43 = vpop.xlane.xlu0 %554  ;;  %v558_v5 = vpop.xlane.xlu1 %557 }
 0x65f   : > { %v565_v4 = vadd.f32 %v561_v42, %v555_v43  ;;  %v566_v6 = vadd.f32 %v562_v44, %v558_v5  ;;  %v1762_v42 = vld [vmem:[%s2056_s22 + $0x10] sm:$0xff] }
 0x661   : > { %1429 = vperm.xlu1 %1723, %v564_v3   ;;  %1434 = vperm.xlu0 %1722, %v565_v4   ;;  %v1763_v4 = vld [vmem:[%s2056_s22 + $0x18] sm:$0xff] }
 0x665   : > { %1439 = vperm.xlu1 %1723, %v566_v6  }
 0x666   : > { %v1336_v49 = vpop.permute.xlu0 %1335 }
 0x667   : > { %v1341_v51 = vrot.slane %v1336_v49, %v2122_v47 }
 0x689   : > { %v1417_v45 = vpop.f32.mrf.mxu0 }
 0x68a   : > { %v1418_v52 = vadd.f32 %v1417_v45, %v1341_v51  ;;  %v1764_v45 = vld [vmem:[%s2056_s22 + $0x20] sm:$0xff] }
 0x68b   : > { %v1419_v50 = vpop.f32.mrf.mxu0 }
 0x68c   : > { %v1420_v53 = vadd.f32 %v1419_v50, %v1341_v51  ;;  %v1445_v54 = vrot.slane %v1418_v52, %v2122_v47  ;;  %v1765_v51 = vld [vmem:[%s2056_s22 + $0x28] sm:$0xff] }
 0x68e   : > { %v1449_v55 = vrot.slane %v1420_v53, %v2122_v47 }
 0x6d8   : > { %v1425_v56 = vpop.permute.xlu1 %1424 }
 0x6d9   : > { %v1450_v57 = vmul.f32 %v1445_v54, %v1425_v56  ;;  %v1451_v58 = vmul.f32 %v1449_v55, %v1425_v56  ;;  %v1767_v56 = vld [vmem:[%s2056_s22 + $0x38] sm:$0xff] }
 0x6db   : > { %v1650_v59 = vmul.f32 -1.442695, %v1450_v57  ;;  %v1651_v60 = vmul.f32 -1.442695, %v1451_v58 }
 0x6dc   : > { %v1430_v61 = vpop.permute.xlu1 %1429  ;;  %v1435_v62 = vpop.permute.xlu0 %1434 }
 0x6dd   : > { %1730 = vpow2.f32 %v1650_v59  ;;  %v1452_v63 = vmul.f32 %v1445_v54, %v1430_v61  ;;  %v1453_v0 = vmul.f32 %v1449_v55, %v1430_v61  ;;  %v1454_v2 = vmul.f32 %v1445_v54, %v1435_v62 }
 0x6de   : > { %1732 = vpow2.f32 %v1651_v60  ;;  %v1455_v9 = vmul.f32 %v1449_v55, %v1435_v62 }
 0x6df   : > { %v1652_v12 = vmul.f32 -1.442695, %v1452_v63  ;;  %v1653_v13 = vmul.f32 -1.442695, %v1453_v0  ;;  %v1654_v14 = vmul.f32 -1.442695, %v1454_v2 }
 0x6e0   : > { %v1655_v15 = vmul.f32 -1.442695, %v1455_v9  ;;  %v1440_v16 = vpop.permute.xlu1 %1439 }
 0x6e1   : > { %1734 = vpow2.f32 %v1652_v12  ;;  %v1456_v47 = vmul.f32 %v1445_v54, %v1440_v16  ;;  %v1457_v17 = vmul.f32 %v1449_v55, %v1440_v16  ;;  %v1766_v54 = vld [vmem:[%s2056_s22 + $0x30] sm:$0xff] }
 0x6e2   : > { %1736 = vpow2.f32 %v1653_v13 }
 0x6e3   : > { %1738 = vpow2.f32 %v1654_v14  ;;  %v1656_v18 = vmul.f32 -1.442695, %v1456_v47  ;;  %v1657_v19 = vmul.f32 -1.442695, %v1457_v17 }
 0x6e4   : > { %1740 = vpow2.f32 %v1655_v15 }
 0x6e5   : > { %1742 = vpow2.f32 %v1656_v18 }
 0x6e6   : > { %1744 = vpow2.f32 %v1657_v19 }
 0x6ea   : > { %v1731_v48 = vpop.eup %1730 }
 0x6eb   : > { %v1733_v20 = vpop.eup %1732  ;;  %v1482_v46 = vadd.f32 1.0, %v1731_v48 }
 0x6ec   : > { %v1483_v21 = vadd.f32 1.0, %v1733_v20 }
 0x6ed   : > { %1746 = vrcp.f32 %v1482_v46 }
 0x6ee   : > { %v1735_v22 = vpop.eup %1734  ;;  %1748 = vrcp.f32 %v1483_v21 }
 0x6ef   : > { %v1737_v23 = vpop.eup %1736  ;;  %v1484_v24 = vadd.f32 1.0, %v1735_v22 }
 0x6f0   : > { %v1739_v25 = vpop.eup %1738  ;;  %v1485_v26 = vadd.f32 1.0, %v1737_v23 }
 0x6f1   : > { %v1741_v27 = vpop.eup %1740  ;;  %1750 = vrcp.f32 %v1484_v24  ;;  %v1486_v28 = vadd.f32 1.0, %v1739_v25 }
 0x6f2   : > { %v1743_v29 = vpop.eup %1742  ;;  %1752 = vrcp.f32 %v1485_v26  ;;  %v1487_v30 = vadd.f32 1.0, %v1741_v27 }
 0x6f3   : > { %v1745_v31 = vpop.eup %1744  ;;  %1754 = vrcp.f32 %v1486_v28  ;;  %v1488_v32 = vadd.f32 1.0, %v1743_v29 }
 0x6f4   : > { %1756 = vrcp.f32 %v1487_v30  ;;  %v1489_v33 = vadd.f32 1.0, %v1745_v31 }
 0x6f5   : > { %1758 = vrcp.f32 %v1488_v32 }
 0x6f6   : > { %1760 = vrcp.f32 %v1489_v33 }
 0x6fa   : > { %v1747_v1 = vpop.eup %1746 }
 0x6fb   : > { %v1749_v34 = vpop.eup %1748  ;;  %v1506_v35 = vadd.f32 1.0, %v1747_v1 }
 0x6fc   : > { %v1507_v36 = vadd.f32 1.0, %v1749_v34 }
 0x6fd   : > { %v1514_v37 = vmul.f32 %v1506_v35, %v2094_v11 }
 0x6fe   : > { %v1751_v38 = vpop.eup %1750  ;;  %v1515_v39 = vmul.f32 %v1507_v36, %v2090_v10 }
 0x6ff   : > { %v1753_v40 = vpop.eup %1752  ;;  %1522 = vst [vmem:[%s2354_s19] sm:$0xff] %v1514_v37  ;;  %v1508_v41 = vadd.f32 1.0, %v1751_v38 }
 0x700   : > { %v1755_v7 = vpop.eup %1754  ;;  %1523 = vst [vmem:[%s2354_s19 + $0x8] sm:$0xff] %v1515_v39  ;;  %v1509_v8 = vadd.f32 1.0, %v1753_v40 }
 0x701   : > { %v1757_v11 = vpop.eup %1756  ;;  %v1516_v10 = vmul.f32 %v1762_v42, %v1508_v41  ;;  %v1510_v43 = vadd.f32 1.0, %v1755_v7 }
 0x702   : > { %v1759_v3 = vpop.eup %1758  ;;  %v1517_v44 = vmul.f32 %v1763_v4, %v1509_v8  ;;  %v1511_v5 = vadd.f32 1.0, %v1757_v11 }
 0x703   : > { %v1761_v6 = vpop.eup %1760  ;;  %1524 = vst [vmem:[%s2354_s19 + $0x10] sm:$0xff] %v1516_v10  ;;  %v1518_v49 = vmul.f32 %v1764_v45, %v1510_v43  ;;  %v1512_v50 = vadd.f32 1.0, %v1759_v3 }
 0x704   : > { %1525 = vst [vmem:[%s2354_s19 + $0x18] sm:$0xff] %v1517_v44  ;;  %v1519_v52 = vmul.f32 %v1765_v51, %v1511_v5  ;;  %v1513_v53 = vadd.f32 1.0, %v1761_v6 }
 0x705   : > { %1526 = vst [vmem:[%s2354_s19 + $0x20] sm:$0xff] %v1518_v49  ;;  %v1520_v55 = vmul.f32 %v1766_v54, %v1512_v50 }
 0x706   : > { %1527 = vst [vmem:[%s2354_s19 + $0x28] sm:$0xff] %v1519_v52  ;;  %v1521_v57 = vmul.f32 %v1767_v56, %v1513_v53 }
 0x707   : > { %1528 = vst [vmem:[%s2354_s19 + $0x30] sm:$0xff] %v1520_v55 }
 0x708   : > { %1529 = vst [vmem:[%s2354_s19 + $0x38] sm:$0xff] %v1521_v57 }
 0x709   : > { %1809 = shalt.err (!%p1806_p10)
}
 0x70a   : > { %s1810_s22 = scalar_lea.hbm %s2371_s29, 1024  ;;  %s1814_s30 = scalar_lea.hbm %s2455_s21, 2048 }
 0x70b   : > { %p1811_p0 = scmp.ne.s32.totalorder %s2371_s29, %s1810_s22  ;;  %p1815_p1 = scmp.lt.s32.totalorder %s2371_s29, %s2455_s21 }
 0x70c   : > { %p1816_p3 = scmp.lt.s32.totalorder %s1814_s30, %s1810_s22 }
 0x70d   : > { %p1812_p2 = pnand %p1811_p0, %p2456_p12 }
 0x70e   : > { %p1817_p6 = por %p1816_p3, %p1815_p1 }
 0x70f   : > { %p1813_p9 = pneg %p1812_p2 }
 0x711   : > { %p1818_p11 = pnand %p1817_p6, %p1813_p9 }
 0x713   : > { %1821 = shalt.err (!%p1818_p11)
}
 0x714   : > { %s1873_s24 = smov 256   ;;  %s1874_s15 = smov 16  }
 0x715   : > { %1667 = dma.vmem_to_hbm [thread:$0]  (%p2456_p12), %s2373_s23, 1024, %s2371_s29, %s1531_s27, %s1873_s24, %s1873_s24, %s1874_s15  }
 0x716 PF: > { %s2457_s17 = sld [smem:[#allocation10_spill]]  ;;  %p2460_p4 = scmp.ge.s32.totalorder %s1860_s18, 2 }
 0x717   : > { %s2458_s28 = sld [smem:[#allocation14_spill]] }
 0x71c   : > { %s1559_s20 = sand.u32 1, %s2457_s17  }
 0x71d   : > { %p2459_p13 = scmp.ne.s32.totalorder %s2458_s28, 0  ;;  %s1560_s22 = scalar_lea.sflag [#allocation6], %s1559_s20 }
 0x71f   : > { %p1674_p5 = pnand %p2460_p4, %p2459_p13 }
 0x721   : > { %p1675_p7 = pneg %p1674_p5 }
 0x723   : > { %1843 = dma.done.wait (%p1675_p7), %s1560_s22, 1024  }
 0x724   : > { %1845 = vsyncadd (%p1675_p7), %s1560_s22, 4294966272  ;;  %s2461_s18 = sld [smem:[#allocation12_spill]]  ;;  %s2464_s15 = smov %s1852_s16 }
 0x725   : > { %s2462_s19 = sld [smem:[#allocation11_spill]] }
 0x726   : > { %s2463_s17 = sld [smem:[#allocation13_spill]] }
 0x72a   : > { %p29_p8 = scmp.ge.s32.totalorder %s2461_s18, 4  }
 0x72b   : > { %s2465_s16 = smov %s2462_s19 }
 0x72c   :  { %31 = sbr.rel (!%p29_p8) target bundleno = 8 (0x8), region = 128 }
 0x731   :  { %1565 = vsyncpa [#allocation5], 1 }
 0x732   :  { %1567 = vsyncpa [#allocation5 + $0x1], 1 }
 0x733   :  { %1568 = vsyncpa [#allocation6], 1 }
 0x734   :  { %1570 = vsyncpa [#allocation6 + $0x1], 1 }

</bundles_post_ra>
